<compile_context>
chip_gen: v7x
topology: tpu7x:2x2x1
jax: 0.10.0
libtpu: 0.0.40
codegen_flags: <defaults>
</compile_context>

<pallas_src>
import jax
import jax.numpy as jnp
from jax.experimental import pallas as pl
from jax.experimental.pallas import tpu as pltpu


# ----------------------------------------------------------------------------
# Small helpers: VMEM budget, single-buffered resident-weight specs.
# ----------------------------------------------------------------------------
def _round_up(x, m):
    return (x + m - 1) // m * m


def _pick_vmem_limit():
    """~3/4 of physical VMEM: 96 MiB on v5e/v6e (128 MiB), 48 MiB on v7x (64 MiB)."""
    try:
        cap = pltpu.get_tpu_info().vmem_capacity_bytes
        return int(max(32 << 20, min(cap * 3 // 4, 96 << 20)))
    except Exception:
        return 48 << 20


_VMEM_LIMIT = _pick_vmem_limit()


def _probe_resident_spec():
    """Return a BlockSpec factory for constant-index ("resident") operands.

    Uses pipeline_mode=pl.Buffered(1) (single buffering — halves the VMEM
    footprint of resident weights, important on v7x) if this JAX/Mosaic
    supports it and produces correct results; otherwise falls back to a plain
    (double-buffered) BlockSpec.
    """
    def _plain(block_shape, index_map):
        return pl.BlockSpec(block_shape, index_map)

    if not hasattr(pl, "Buffered"):
        return _plain

    def _single(block_shape, index_map):
        return pl.BlockSpec(block_shape, index_map, pipeline_mode=pl.Buffered(1))

    try:
        def _copy_kernel(x_ref, o_ref):
            o_ref[...] = x_ref[...]

        x = jnp.arange(8 * 128, dtype=jnp.float32).reshape(8, 128)
        out = pl.pallas_call(
            _copy_kernel,
            out_shape=jax.ShapeDtypeStruct((16, 128), jnp.float32),
            grid=(2,),
            in_specs=[_single((8, 128), lambda i: (0, 0))],
            out_specs=pl.BlockSpec((8, 128), lambda i: (i, 0)),
        )(x)
        out = jax.block_until_ready(out)
        expected = jnp.concatenate([x, x], axis=0)
        if bool(jnp.allclose(out, expected)):
            return _single
        return _plain
    except Exception:
        return _plain


_resident_spec = _probe_resident_spec()


# ----------------------------------------------------------------------------
# Kernel 1: multi-head self-attention + AddNorm.
# Grid = (batch, head): batch is "parallel" (megacore), head is an "arbitrary"
# reduction axis accumulating the output projection into a VMEM scratch.
# ----------------------------------------------------------------------------
def _attn_addnorm_kernel(valid_lens_ref,                     # scalar prefetch (SMEM)
                         x_ref, wq_ref, bq_ref, wk_ref, bk_ref,
                         wv_ref, bv_ref, wo_ref, bo_ref,
                         gamma_ref, beta_ref, out_ref, acc_ref):
    b = pl.program_id(0)
    h = pl.program_id(1)
    num_heads = pl.num_programs(1)

    x = x_ref[0]                               # (S, D) f32, resident across heads
    S = x.shape[0]
    dh = wq_ref.shape[2]
    scale = float(dh) ** -0.5

    @pl.when(h == 0)
    def _():
        acc_ref[...] = jnp.zeros_like(acc_ref)

    x_bf = x.astype(jnp.bfloat16)
    # Per-head projections: bf16 operands on the MXU, f32 accumulation.
    # 1/sqrt(dh) folded into q once (S*dh multiplies instead of S*S).
    q = (jnp.dot(x_bf, wq_ref[0], preferred_element_type=jnp.float32)
         + bq_ref[0]) * scale                                  # (S, dh)
    k = jnp.dot(x_bf, wk_ref[0], preferred_element_type=jnp.float32) + bk_ref[0]
    v = jnp.dot(x_bf, wv_ref[0], preferred_element_type=jnp.float32) + bv_ref[0]

    # scores = q @ k^T (contract dh); mask keys >= valid_len (d2l masked_softmax).
    scores = jax.lax.dot_general(
        q.astype(jnp.bfloat16), k.astype(jnp.bfloat16),
        dimension_numbers=(((1,), (1,)), ((), ())),
        preferred_element_type=jnp.float32)                    # (S, S)
    valid_len = valid_lens_ref[b]
    key_idx = jax.lax.broadcasted_iota(jnp.int32, (S, S), 1)
    scores = jnp.where(key_idx < valid_len, scores, -1e6)

    # Softmax in f32; divide on the EUP via approx reciprocal.
    scores = scores - jnp.max(scores, axis=-1, keepdims=True)
    p = jnp.exp(scores)
    p = p * pl.reciprocal(jnp.sum(p, axis=-1, keepdims=True), approx=True)

    ctx = jnp.dot(p.astype(jnp.bfloat16), v.astype(jnp.bfloat16),
                  preferred_element_type=jnp.float32)          # (S, dh)

    # Partial output projection for this head, accumulated over heads:
    #   concat_h(ctx_h) @ Wo == sum_h ctx_h @ Wo[h*dh:(h+1)*dh, :]
    acc_ref[...] += jnp.dot(ctx.astype(jnp.bfloat16), wo_ref[0],
                            preferred_element_type=jnp.float32)

    @pl.when(h == num_heads - 1)
    def _():
        # AddNorm (residual + LayerNorm, biased var, eps=1e-5), all f32.
        y = x + acc_ref[...] + bo_ref[...]
        mean = jnp.mean(y, axis=-1, keepdims=True)
        var = jnp.mean((y - mean) * (y - mean), axis=-1, keepdims=True)
        y = (y - mean) * jax.lax.rsqrt(var + 1e-5)
        out_ref[0] = (y * gamma_ref[...] + beta_ref[...]).astype(out_ref.dtype)


def _attn_addnorm(X, valid_lens, layer, num_heads):
    B, S, D = X.shape
    H = num_heads
    dh = D // H

    x_spec = pl.BlockSpec((1, S, D), lambda b, h, vl: (b, 0, 0))   # resident over h
    w_spec = pl.BlockSpec((1, D, dh), lambda b, h, vl: (h, 0, 0))  # per-head weight
    wo_spec = pl.BlockSpec((1, dh, D), lambda b, h, vl: (h, 0, 0))
    hb_spec = pl.BlockSpec((1, 1, dh), lambda b, h, vl: (h, 0, 0))
    vec_spec = pl.BlockSpec((1, D), lambda b, h, vl: (0, 0))

    flops = B * (4 * 2 * S * D * D + 2 * 2 * S * S * D)
    bytes_accessed = (4 * 2 * B * S * D          # X in / out (f32)
                      + 2 * 4 * D * D * B        # bf16 head-blocked weights (refetched per b)
                      + 4 * 6 * D)               # biases / LN params (f32)

    return pl.pallas_call(
        _attn_addnorm_kernel,
        out_shape=jax.ShapeDtypeStruct((B, S, D), jnp.float32),
        grid_spec=pltpu.PrefetchScalarGridSpec(
            num_scalar_prefetch=1,
            grid=(B, H),
            in_specs=[x_spec,
                      w_spec, hb_spec,     # wq, bq
                      w_spec, hb_spec,     # wk, bk
                      w_spec, hb_spec,     # wv, bv
                      wo_spec, vec_spec,   # wo, bo
                      vec_spec, vec_spec], # gamma1, beta1
            out_specs=x_spec,
            scratch_shapes=[pltpu.VMEM((S, D), jnp.float32)]),
        compiler_params=pltpu.CompilerParams(
            dimension_semantics=("parallel", "arbitrary"),
            vmem_limit_bytes=_VMEM_LIMIT),
        cost_estimate=pl.CostEstimate(
            flops=flops, transcendentals=B * H * S * S,
            bytes_accessed=bytes_accessed),
    )(valid_lens, X,
      layer["wq"], layer["bq"], layer["wk"], layer["bk"],
      layer["wv"], layer["bv"], layer["wo"], layer["bo"],
      layer["gamma1"], layer["beta1"])


# ----------------------------------------------------------------------------
# Kernel 2: position-wise FFN + AddNorm (row-tiled over all B*S tokens).
# ----------------------------------------------------------------------------
def _ffn_addnorm_kernel(y_ref, w1_ref, b1_ref, w2_ref, b2_ref,
                        gamma_ref, beta_ref, out_ref):
    y = y_ref[...]                                   # (tm, D) f32
    hdn = jnp.dot(y.astype(jnp.bfloat16), w1_ref[...],
                  preferred_element_type=jnp.float32) + b1_ref[...]
    hdn = jnp.maximum(hdn, 0.0)
    o = jnp.dot(hdn.astype(jnp.bfloat16), w2_ref[...],
                preferred_element_type=jnp.float32) + b2_ref[...]
    z = y + o
    mean = jnp.mean(z, axis=-1, keepdims=True)
    var = jnp.mean((z - mean) * (z - mean), axis=-1, keepdims=True)
    z = (z - mean) * jax.lax.rsqrt(var + 1e-5)
    out_ref[...] = (z * gamma_ref[...] + beta_ref[...]).astype(out_ref.dtype)


def _ffn_addnorm(X, layer, row_tile=256):
    B, S, D = X.shape
    F = layer["w1"].shape[1]
    M = B * S
    # Row tile: up to 256 rows (fills the MXU, amortizes ~600-cycle step
    # overhead), multiple of 8 sublanes, capped by the actual token count.
    tm = max(8, min(row_tile, _round_up(M, 8)))
    M_pad = _round_up(M, tm)
    Y = X.reshape(M, D)
    if M_pad != M:
        Y = jnp.pad(Y, ((0, M_pad - M), (0, 0)))

    flops = 2 * 2 * M_pad * D * F
    bytes_accessed = 4 * 2 * M_pad * D + 2 * 2 * D * F + 4 * (F + 3 * D)

    out = pl.pallas_call(
        _ffn_addnorm_kernel,
        out_shape=jax.ShapeDtypeStruct((M_pad, D), jnp.float32),
        grid=(M_pad // tm,),
        in_specs=[
            pl.BlockSpec((tm, D), lambda i: (i, 0)),
            _resident_spec((D, F), lambda i: (0, 0)),   # w1: resident, single-buffered
            pl.BlockSpec((1, F), lambda i: (0, 0)),
            _resident_spec((F, D), lambda i: (0, 0)),   # w2: resident, single-buffered
            pl.BlockSpec((1, D), lambda i: (0, 0)),
            pl.BlockSpec((1, D), lambda i: (0, 0)),
            pl.BlockSpec((1, D), lambda i: (0, 0)),
        ],
        out_specs=pl.BlockSpec((tm, D), lambda i: (i, 0)),
        compiler_params=pltpu.CompilerParams(
            dimension_semantics=("parallel",),
            vmem_limit_bytes=_VMEM_LIMIT),
        cost_estimate=pl.CostEstimate(
            flops=flops, transcendentals=0, bytes_accessed=bytes_accessed),
    )(Y, layer["w1"], layer["b1"], layer["w2"], layer["b2"],
      layer["gamma2"], layer["beta2"])
    return out[:M].reshape(B, S, D)


# ----------------------------------------------------------------------------
# Parameter init (natural f32 layout), one-time kernel packing, full forward,
# and a pure-JAX reference.
# ----------------------------------------------------------------------------
def init_bert_encoder_params(key, vocab_size, num_hiddens, ffn_num_hiddens,
                             num_layers, max_len):
    keys = jax.random.split(key, 3 + num_layers)
    D, F = num_hiddens, ffn_num_hiddens
    params = dict(
        token_emb=0.1 * jax.random.normal(keys[0], (vocab_size, D), jnp.float32),
        seg_emb=0.1 * jax.random.normal(keys[1], (2, D), jnp.float32),
        pos_emb=0.1 * jax.random.normal(keys[2], (1, max_len, D), jnp.float32),
        layers=[],
    )
    for l in range(num_layers):
        lk = jax.random.split(keys[3 + l], 6)
        params["layers"].append(dict(
            wq=0.05 * jax.random.normal(lk[0], (D, D), jnp.float32),
            bq=jnp.zeros((1, D), jnp.float32),
            wk=0.05 * jax.random.normal(lk[1], (D, D), jnp.float32),
            bk=jnp.zeros((1, D), jnp.float32),
            wv=0.05 * jax.random.normal(lk[2], (D, D), jnp.float32),
            bv=jnp.zeros((1, D), jnp.float32),
            wo=0.05 * jax.random.normal(lk[3], (D, D), jnp.float32),
            bo=jnp.zeros((1, D), jnp.float32),
            gamma1=jnp.ones((1, D), jnp.float32),
            beta1=jnp.zeros((1, D), jnp.float32),
            w1=0.05 * jax.random.normal(lk[4], (D, F), jnp.float32),
            b1=jnp.zeros((1, F), jnp.float32),
            w2=0.05 * jax.random.normal(lk[5], (F, D), jnp.float32),
            b2=jnp.zeros((1, D), jnp.float32),
            gamma2=jnp.ones((1, D), jnp.float32),
            beta2=jnp.zeros((1, D), jnp.float32),
        ))
    return params


def prepare_encoder_params(params, num_heads):
    """One-time packing for the kernels: bf16 matmul weights; attention
    weights/biases in head-major layout so per-head blocks are selected by
    BlockSpec index_map (no in-kernel slicing or casting per grid step)."""
    D = params["token_emb"].shape[1]
    dh = D // num_heads

    def head_major_w(w):    # (D, D) -> (H, D, dh): column block per head
        return w.reshape(D, num_heads, dh).transpose(1, 0, 2).astype(jnp.bfloat16)

    def head_major_b(bias):  # (1, D) -> (H, 1, dh)
        return bias.reshape(num_heads, dh)[:, None, :].astype(jnp.float32)

    prepped = dict(token_emb=params["token_emb"], seg_emb=params["seg_emb"],
                   pos_emb=params["pos_emb"], layers=[])
    for layer in params["layers"]:
        prepped["layers"].append(dict(
            wq=head_major_w(layer["wq"]), bq=head_major_b(layer["bq"]),
            wk=head_major_w(layer["wk"]), bk=head_major_b(layer["bk"]),
            wv=head_major_w(layer["wv"]), bv=head_major_b(layer["bv"]),
            wo=layer["wo"].reshape(num_heads, dh, D).astype(jnp.bfloat16),
            bo=layer["bo"],
            gamma1=layer["gamma1"], beta1=layer["beta1"],
            w1=layer["w1"].astype(jnp.bfloat16), b1=layer["b1"],
            w2=layer["w2"].astype(jnp.bfloat16), b2=layer["b2"],
            gamma2=layer["gamma2"], beta2=layer["beta2"],
        ))
    return prepped


def bert_encoder_forward(tokens, segments, valid_lens, kparams, num_heads):
    B, S = tokens.shape
    # Embedding gathers + 3-way add left to XLA: it fuses the add into the
    # gathers, so a standalone Pallas elementwise kernel would only add an
    # extra HBM round trip (per perf review).
    X = (kparams["token_emb"][tokens] + kparams["seg_emb"][segments]
         + kparams["pos_emb"][:, :S, :])
    for layer in kparams["layers"]:
        X = _attn_addnorm(X, valid_lens, layer, num_heads)
        X = _ffn_addnorm(X, layer)
    return X


def bert_encoder_reference(tokens, segments, valid_lens, params, num_heads):
    """Pure-JAX f32 reference mirroring the PyTorch forward (eval mode)."""
    B, S = tokens.shape
    X = (params["token_emb"][tokens] + params["seg_emb"][segments]
         + params["pos_emb"][:, :S, :])
    D = X.shape[-1]
    dh = D // num_heads

    def layer_norm(x, gamma, beta):
        mean = jnp.mean(x, axis=-1, keepdims=True)
        var = jnp.mean((x - mean) ** 2, axis=-1, keepdims=True)
        return (x - mean) / jnp.sqrt(var + 1e-5) * gamma + beta

    key_idx = jnp.arange(S)
    for layer in params["layers"]:
        q = X @ layer["wq"] + layer["bq"]
        k = X @ layer["wk"] + layer["bk"]
        v = X @ layer["wv"] + layer["bv"]
        qh = q.reshape(B, S, num_heads, dh).transpose(0, 2, 1, 3)
        kh = k.reshape(B, S, num_heads, dh).transpose(0, 2, 1, 3)
        vh = v.reshape(B, S, num_heads, dh).transpose(0, 2, 1, 3)
        scores = jnp.einsum("bhqd,bhkd->bhqk", qh, kh) / jnp.sqrt(dh)
        mask = key_idx[None, None, None, :] < valid_lens[:, None, None, None]
        scores = jnp.where(mask, scores, -1e6)
        w = jax.nn.softmax(scores, axis=-1)
        o = jnp.einsum("bhqk,bhkd->bhqd", w, vh).transpose(0, 2, 1, 3).reshape(B, S, D)
        o = o @ layer["wo"] + layer["bo"]
        X = layer_norm(X + o, layer["gamma1"], layer["beta1"])
        hdn = jnp.maximum(X @ layer["w1"] + layer["b1"], 0.0)
        f = hdn @ layer["w2"] + layer["b2"]
        X = layer_norm(X + f, layer["gamma2"], layer["beta2"])
    return X


if __name__ == "__main__":
    # Small shapes consistent with the module.
    vocab_size = 128
    num_hiddens = 32
    ffn_num_hiddens = 64
    num_heads = 2
    num_layers = 2
    max_len = 64
    batch, seq = 2, 8

    key = jax.random.PRNGKey(0)
    k_tok, k_param = jax.random.split(key)
    tokens = jax.random.randint(k_tok, (batch, seq), 0, vocab_size, dtype=jnp.int32)
    segments = jnp.array([[0, 0, 0, 0, 1, 1, 1, 1],
                          [0, 0, 0, 1, 1, 1, 1, 1]], dtype=jnp.int32)
    valid_lens = jnp.array([8, 6], dtype=jnp.int32)

    params = init_bert_encoder_params(k_param, vocab_size, num_hiddens,
                                      ffn_num_hiddens, num_layers, max_len)
    kparams = prepare_encoder_params(params, num_heads)   # one-time bf16 packing

    forward = jax.jit(bert_encoder_forward, static_argnums=(4,))
    y = forward(tokens, segments, valid_lens, kparams, num_heads)
    y = jax.block_until_ready(y)

    y_ref = bert_encoder_reference(tokens, segments, valid_lens, params, num_heads)
    assert y.shape == (batch, seq, num_hiddens)
    max_err = float(jnp.max(jnp.abs(y - y_ref)))
    # bf16 MXU operands + bf16-packed weights vs f32 reference -> loose tolerance.
    assert jnp.allclose(y, y_ref, atol=5e-2, rtol=5e-2), f"mismatch, max err {max_err}"

    print("KERNEL_OK")
</pallas_src>

<mosaic_0001>
module attributes {stable_mosaic.version = 11 : i64} {
  func.func @_copy_kernel(%arg0: i32, %arg1: memref<8x128xf32, #tpu.memory_space<vmem>>, %arg2: memref<8x128xf32, #tpu.memory_space<vmem>>) attributes {dimension_semantics = [#tpu.dimension_semantics<arbitrary>], iteration_bounds = array<i64: 2>, scalar_prefetch = 0 : i64, scratch_operands = 0 : i64, tpu.core_type = #tpu.core_type<tc>, window_params = [{pipeline_mode = #tpu.pipeline_mode<synchronous>, transform_indices = @transform_0, window_bounds = array<i64: 8, 128>}, {transform_indices = @transform_1, window_bounds = array<i64: 8, 128>}]} {
    %c0 = arith.constant 0 : index
    %c0_0 = arith.constant 0 : index
    %0 = vector.load %arg1[%c0, %c0_0] : memref<8x128xf32, #tpu.memory_space<vmem>>, vector<8x128xf32>
    %c0_1 = arith.constant 0 : index
    %c0_2 = arith.constant 0 : index
    %1 = vector.load %arg2[%c0_1, %c0_2] : memref<8x128xf32, #tpu.memory_space<vmem>>, vector<8x128xf32>
    tpu.vector_store %arg2[%c0_1, %c0_2], %0 {strides = array<i32>} : memref<8x128xf32, #tpu.memory_space<vmem>>, vector<8x128xf32>,
    return
  }
  func.func @transform_0(%arg0: i32) -> (i32, i32) {
    %c0_i32 = arith.constant 0 : i32
    %c0_i32_0 = arith.constant 0 : i32
    %c0_i32_1 = arith.constant 0 : i32
    return %c0_i32, %c0_i32_0 : i32, i32
  }
  func.func @transform_1(%arg0: i32) -> (i32, i32) {
    %c0_i32 = arith.constant 0 : i32
    %c0_i32_0 = arith.constant 0 : i32
    return %arg0, %c0_i32 : i32, i32
  }
}

module attributes {stable_mosaic.version = 11 : i64} {
  func.func @_ffn_addnorm_kernel(%arg0: i32, %arg1: memref<16x32xf32, #tpu.memory_space<vmem>>, %arg2: memref<32x64xbf16, #tpu.memory_space<vmem>>, %arg3: memref<1x64xf32, #tpu.memory_space<vmem>>, %arg4: memref<64x32xbf16, #tpu.memory_space<vmem>>, %arg5: memref<1x32xf32, #tpu.memory_space<vmem>>, %arg6: memref<1x32xf32, #tpu.memory_space<vmem>>, %arg7: memref<1x32xf32, #tpu.memory_space<vmem>>, %arg8: memref<16x32xf32, #tpu.memory_space<vmem>>) attributes {dimension_semantics = [#tpu.dimension_semantics<parallel>], iteration_bounds = array<i64: 1>, scalar_prefetch = 0 : i64, scratch_operands = 0 : i64, tpu.core_type = #tpu.core_type<tc>, window_params = [{transform_indices = @transform_0, window_bounds = array<i64: 16, 32>}, {pipeline_mode = #tpu.pipeline_mode<synchronous>, transform_indices = @transform_1, window_bounds = array<i64: 32, 64>}, {pipeline_mode = #tpu.pipeline_mode<synchronous>, transform_indices = @transform_2, window_bounds = array<i64: 1, 64>}, {pipeline_mode = #tpu.pipeline_mode<synchronous>, transform_indices = @transform_3, window_bounds = array<i64: 64, 32>}, {pipeline_mode = #tpu.pipeline_mode<synchronous>, transform_indices = @transform_4, window_bounds = array<i64: 1, 32>}, {pipeline_mode = #tpu.pipeline_mode<synchronous>, transform_indices = @transform_5, window_bounds = array<i64: 1, 32>}, {pipeline_mode = #tpu.pipeline_mode<synchronous>, transform_indices = @transform_6, window_bounds = array<i64: 1, 32>}, {transform_indices = @transform_7, window_bounds = array<i64: 16, 32>}]} {
    %c0 = arith.constant 0 : index
    %c0_0 = arith.constant 0 : index
    %0 = vector.load %arg1[%c0, %c0_0] : memref<16x32xf32, #tpu.memory_space<vmem>>, vector<16x32xf32>
    %1 = arith.truncf %0 : vector<16x32xf32> to vector<16x32xbf16>
    %c0_1 = arith.constant 0 : index
    %c0_2 = arith.constant 0 : index
    %2 = vector.load %arg2[%c0_1, %c0_2] : memref<32x64xbf16, #tpu.memory_space<vmem>>, vector<32x64xbf16>
    %cst = arith.constant dense<0.000000e+00> : vector<16x64xf32>
    %3 = tpu.matmul %1, %2, %cst {dimension_numbers = #tpu.dot_dimension_numbers<[1], [0], [0], [1], [0, 0, 1, 1], [], []>} : vector<16x32xbf16>, vector<32x64xbf16>, vector<16x64xf32> -> vector<16x64xf32>
    %c0_3 = arith.constant 0 : index
    %c0_4 = arith.constant 0 : index
    %4 = vector.load %arg3[%c0_3, %c0_4] : memref<1x64xf32, #tpu.memory_space<vmem>>, vector<1x64xf32>
    %5 = vector.broadcast %4 : vector<1x64xf32> to vector<16x64xf32>
    %6 = arith.addf %3, %5 : vector<16x64xf32>
    %cst_5 = arith.constant 0.000000e+00 : f32
    %7 = vector.broadcast %cst_5 : f32 to vector<16x64xf32>
    %8 = arith.maximumf %6, %7 : vector<16x64xf32>
    %9 = arith.truncf %8 : vector<16x64xf32> to vector<16x64xbf16>
    %c0_6 = arith.constant 0 : index
    %c0_7 = arith.constant 0 : index
    %10 = vector.load %arg4[%c0_6, %c0_7] : memref<64x32xbf16, #tpu.memory_space<vmem>>, vector<64x32xbf16>
    %cst_8 = arith.constant dense<0.000000e+00> : vector<16x32xf32>
    %11 = tpu.matmul %9, %10, %cst_8 {dimension_numbers = #tpu.dot_dimension_numbers<[1], [0], [0], [1], [0, 0, 1, 1], [], []>} : vector<16x64xbf16>, vector<64x32xbf16>, vector<16x32xf32> -> vector<16x32xf32>
    %c0_9 = arith.constant 0 : index
    %c0_10 = arith.constant 0 : index
    %12 = vector.load %arg5[%c0_9, %c0_10] : memref<1x32xf32, #tpu.memory_space<vmem>>, vector<1x32xf32>
    %13 = vector.broadcast %12 : vector<1x32xf32> to vector<16x32xf32>
    %14 = arith.addf %11, %13 : vector<16x32xf32>
    %15 = arith.addf %0, %14 : vector<16x32xf32>
    %cst_11 = arith.constant dense<0.000000e+00> : vector<16xf32>
    %16 = vector.multi_reduction <add>, %15, %cst_11 [1] : vector<16x32xf32> to vector<16xf32>
    %17 = vector.shape_cast %16 : vector<16xf32> to vector<16x1xf32>
    %cst_12 = arith.constant 3.200000e+01 : f32
    %18 = vector.broadcast %cst_12 : f32 to vector<16x1xf32>
    %19 = arith.divf %17, %18 : vector<16x1xf32>
    %20 = vector.broadcast %19 : vector<16x1xf32> to vector<16x32xf32>
    %21 = arith.subf %15, %20 : vector<16x32xf32>
    %22 = vector.broadcast %19 : vector<16x1xf32> to vector<16x32xf32>
    %23 = arith.subf %15, %22 : vector<16x32xf32>
    %24 = arith.mulf %21, %23 : vector<16x32xf32>
    %cst_13 = arith.constant dense<0.000000e+00> : vector<16xf32>
    %25 = vector.multi_reduction <add>, %24, %cst_13 [1] : vector<16x32xf32> to vector<16xf32>
    %26 = vector.shape_cast %25 : vector<16xf32> to vector<16x1xf32>
    %cst_14 = arith.constant 3.200000e+01 : f32
    %27 = vector.broadcast %cst_14 : f32 to vector<16x1xf32>
    %28 = arith.divf %26, %27 : vector<16x1xf32>
    %29 = vector.broadcast %19 : vector<16x1xf32> to vector<16x32xf32>
    %30 = arith.subf %15, %29 : vector<16x32xf32>
    %cst_15 = arith.constant 9.99999974E-6 : f32
    %31 = vector.broadcast %cst_15 : f32 to vector<16x1xf32>
    %32 = arith.addf %28, %31 : vector<16x1xf32>
    %33 = math.rsqrt %32 : vector<16x1xf32>
    %34 = vector.broadcast %33 : vector<16x1xf32> to vector<16x32xf32>
    %35 = arith.mulf %30, %34 : vector<16x32xf32>
    %c0_16 = arith.constant 0 : index
    %c0_17 = arith.constant 0 : index
    %36 = vector.load %arg6[%c0_16, %c0_17] : memref<1x32xf32, #tpu.memory_space<vmem>>, vector<1x32xf32>
    %37 = vector.broadcast %36 : vector<1x32xf32> to vector<16x32xf32>
    %38 = arith.mulf %35, %37 : vector<16x32xf32>
    %c0_18 = arith.constant 0 : index
    %c0_19 = arith.constant 0 : index
    %39 = vector.load %arg7[%c0_18, %c0_19] : memref<1x32xf32, #tpu.memory_space<vmem>>, vector<1x32xf32>
    %40 = vector.broadcast %39 : vector<1x32xf32> to vector<16x32xf32>
    %41 = arith.addf %38, %40 : vector<16x32xf32>
    %c0_20 = arith.constant 0 : index
    %c0_21 = arith.constant 0 : index
    %42 = vector.load %arg8[%c0_20, %c0_21] : memref<16x32xf32, #tpu.memory_space<vmem>>, vector<16x32xf32>
    tpu.vector_store %arg8[%c0_20, %c0_21], %41 {strides = array<i32>} : memref<16x32xf32, #tpu.memory_space<vmem>>, vector<16x32xf32>,
    return
  }
  func.func @transform_0(%arg0: i32) -> (i32, i32) {
    %c0_i32 = arith.constant 0 : i32
    %c0_i32_0 = arith.constant 0 : i32
    return %arg0, %c0_i32 : i32, i32
  }
  func.func @transform_1(%arg0: i32) -> (i32, i32) {
    %c0_i32 = arith.constant 0 : i32
    %c0_i32_0 = arith.constant 0 : i32
    %c0_i32_1 = arith.constant 0 : i32
    return %c0_i32, %c0_i32_0 : i32, i32
  }
  func.func @transform_2(%arg0: i32) -> (i32, i32) {
    %c0_i32 = arith.constant 0 : i32
    %c0_i32_0 = arith.constant 0 : i32
    %c0_i32_1 = arith.constant 0 : i32
    return %c0_i32, %c0_i32_0 : i32, i32
  }
  func.func @transform_3(%arg0: i32) -> (i32, i32) {
    %c0_i32 = arith.constant 0 : i32
    %c0_i32_0 = arith.constant 0 : i32
    %c0_i32_1 = arith.constant 0 : i32
    return %c0_i32, %c0_i32_0 : i32, i32
  }
  func.func @transform_4(%arg0: i32) -> (i32, i32) {
    %c0_i32 = arith.constant 0 : i32
    %c0_i32_0 = arith.constant 0 : i32
    %c0_i32_1 = arith.constant 0 : i32
    return %c0_i32, %c0_i32_0 : i32, i32
  }
  func.func @transform_5(%arg0: i32) -> (i32, i32) {
    %c0_i32 = arith.constant 0 : i32
    %c0_i32_0 = arith.constant 0 : i32
    %c0_i32_1 = arith.constant 0 : i32
    return %c0_i32, %c0_i32_0 : i32, i32
  }
  func.func @transform_6(%arg0: i32) -> (i32, i32) {
    %c0_i32 = arith.constant 0 : i32
    %c0_i32_0 = arith.constant 0 : i32
    %c0_i32_1 = arith.constant 0 : i32
    return %c0_i32, %c0_i32_0 : i32, i32
  }
  func.func @transform_7(%arg0: i32) -> (i32, i32) {
    %c0_i32 = arith.constant 0 : i32
    %c0_i32_0 = arith.constant 0 : i32
    return %arg0, %c0_i32 : i32, i32
  }
}

module attributes {stable_mosaic.version = 11 : i64} {
  func.func @_attn_addnorm_kernel(%arg0: i32, %arg1: i32, %arg2: memref<2xi32, #tpu.memory_space<smem>>, %arg3: memref<1x8x32xf32, #tpu.memory_space<vmem>>, %arg4: memref<1x32x16xbf16, #tpu.memory_space<vmem>>, %arg5: memref<1x1x16xf32, #tpu.memory_space<vmem>>, %arg6: memref<1x32x16xbf16, #tpu.memory_space<vmem>>, %arg7: memref<1x1x16xf32, #tpu.memory_space<vmem>>, %arg8: memref<1x32x16xbf16, #tpu.memory_space<vmem>>, %arg9: memref<1x1x16xf32, #tpu.memory_space<vmem>>, %arg10: memref<1x16x32xbf16, #tpu.memory_space<vmem>>, %arg11: memref<1x32xf32, #tpu.memory_space<vmem>>, %arg12: memref<1x32xf32, #tpu.memory_space<vmem>>, %arg13: memref<1x32xf32, #tpu.memory_space<vmem>>, %arg14: memref<1x8x32xf32, #tpu.memory_space<vmem>>, %arg15: memref<8x32xf32, #tpu.memory_space<vmem>>) attributes {dimension_semantics = [#tpu.dimension_semantics<parallel>, #tpu.dimension_semantics<arbitrary>], iteration_bounds = array<i64: 2, 2>, scalar_prefetch = 1 : i64, scratch_operands = 1 : i64, tpu.core_type = #tpu.core_type<tc>, window_params = [{transform_indices = @transform_0, window_bounds = array<i64: 1, 8, 32>}, {transform_indices = @transform_1, window_bounds = array<i64: 1, 32, 16>}, {transform_indices = @transform_2, window_bounds = array<i64: 1, 1, 16>}, {transform_indices = @transform_3, window_bounds = array<i64: 1, 32, 16>}, {transform_indices = @transform_4, window_bounds = array<i64: 1, 1, 16>}, {transform_indices = @transform_5, window_bounds = array<i64: 1, 32, 16>}, {transform_indices = @transform_6, window_bounds = array<i64: 1, 1, 16>}, {transform_indices = @transform_7, window_bounds = array<i64: 1, 16, 32>}, {pipeline_mode = #tpu.pipeline_mode<synchronous>, transform_indices = @transform_8, window_bounds = array<i64: 1, 32>}, {pipeline_mode = #tpu.pipeline_mode<synchronous>, transform_indices = @transform_9, window_bounds = array<i64: 1, 32>}, {pipeline_mode = #tpu.pipeline_mode<synchronous>, transform_indices = @transform_10, window_bounds = array<i64: 1, 32>}, {transform_indices = @transform_11, window_bounds = array<i64: 1, 8, 32>}]} {
    %c0 = arith.constant 0 : index
    %c0_0 = arith.constant 0 : index
    %c0_1 = arith.constant 0 : index
    %0 = vector.load %arg3[%c0, %c0_0, %c0_1] : memref<1x8x32xf32, #tpu.memory_space<vmem>>, vector<1x8x32xf32>
    %1 = vector.shape_cast %0 : vector<1x8x32xf32> to vector<8x32xf32>
    %c0_i32 = arith.constant 0 : i32
    %2 = arith.cmpi eq, %arg1, %c0_i32 : i32
    %3 = arith.extui %2 : i1 to i32
    %c0_i32_2 = arith.constant 0 : i32
    %4 = arith.cmpi ne, %3, %c0_i32_2 : i32
    scf.if %4 {
      %cst_38 = arith.constant 0.000000e+00 : f32
      %62 = vector.broadcast %cst_38 : f32 to vector<8x32xf32>
      %c0_39 = arith.constant 0 : index
      %c0_40 = arith.constant 0 : index
      %63 = vector.load %arg15[%c0_39, %c0_40] : memref<8x32xf32, #tpu.memory_space<vmem>>, vector<8x32xf32>
      tpu.vector_store %arg15[%c0_39, %c0_40], %62 {strides = array<i32>} : memref<8x32xf32, #tpu.memory_space<vmem>>, vector<8x32xf32>,
    } else {
    }
    %5 = arith.truncf %1 : vector<8x32xf32> to vector<8x32xbf16>
    %c0_3 = arith.constant 0 : index
    %c0_4 = arith.constant 0 : index
    %c0_5 = arith.constant 0 : index
    %6 = vector.load %arg4[%c0_3, %c0_4, %c0_5] : memref<1x32x16xbf16, #tpu.memory_space<vmem>>, vector<1x32x16xbf16>
    %7 = vector.shape_cast %6 : vector<1x32x16xbf16> to vector<32x16xbf16>
    %cst = arith.constant dense<0.000000e+00> : vector<8x16xf32>
    %8 = tpu.matmul %5, %7, %cst {dimension_numbers = #tpu.dot_dimension_numbers<[1], [0], [0], [1], [0, 0, 1, 1], [], []>} : vector<8x32xbf16>, vector<32x16xbf16>, vector<8x16xf32> -> vector<8x16xf32>
    %c0_6 = arith.constant 0 : index
    %c0_7 = arith.constant 0 : index
    %c0_8 = arith.constant 0 : index
    %9 = vector.load %arg5[%c0_6, %c0_7, %c0_8] : memref<1x1x16xf32, #tpu.memory_space<vmem>>, vector<1x1x16xf32>
    %10 = vector.shape_cast %9 : vector<1x1x16xf32> to vector<1x16xf32>
    %11 = vector.broadcast %10 : vector<1x16xf32> to vector<8x16xf32>
    %12 = arith.addf %8, %11 : vector<8x16xf32>
    %cst_9 = arith.constant 2.500000e-01 : f32
    %13 = vector.broadcast %cst_9 : f32 to vector<8x16xf32>
    %14 = arith.mulf %12, %13 : vector<8x16xf32>
    %c0_10 = arith.constant 0 : index
    %c0_11 = arith.constant 0 : index
    %c0_12 = arith.constant 0 : index
    %15 = vector.load %arg6[%c0_10, %c0_11, %c0_12] : memref<1x32x16xbf16, #tpu.memory_space<vmem>>, vector<1x32x16xbf16>
    %16 = vector.shape_cast %15 : vector<1x32x16xbf16> to vector<32x16xbf16>
    %cst_13 = arith.constant dense<0.000000e+00> : vector<8x16xf32>
    %17 = tpu.matmul %5, %16, %cst_13 {dimension_numbers = #tpu.dot_dimension_numbers<[1], [0], [0], [1], [0, 0, 1, 1], [], []>} : vector<8x32xbf16>, vector<32x16xbf16>, vector<8x16xf32> -> vector<8x16xf32>
    %c0_14 = arith.constant 0 : index
    %c0_15 = arith.constant 0 : index
    %c0_16 = arith.constant 0 : index
    %18 = vector.load %arg7[%c0_14, %c0_15, %c0_16] : memref<1x1x16xf32, #tpu.memory_space<vmem>>, vector<1x1x16xf32>
    %19 = vector.shape_cast %18 : vector<1x1x16xf32> to vector<1x16xf32>
    %20 = vector.broadcast %19 : vector<1x16xf32> to vector<8x16xf32>
    %21 = arith.addf %17, %20 : vector<8x16xf32>
    %c0_17 = arith.constant 0 : index
    %c0_18 = arith.constant 0 : index
    %c0_19 = arith.constant 0 : index
    %22 = vector.load %arg8[%c0_17, %c0_18, %c0_19] : memref<1x32x16xbf16, #tpu.memory_space<vmem>>, vector<1x32x16xbf16>
    %23 = vector.shape_cast %22 : vector<1x32x16xbf16> to vector<32x16xbf16>
    %cst_20 = arith.constant dense<0.000000e+00> : vector<8x16xf32>
    %24 = tpu.matmul %5, %23, %cst_20 {dimension_numbers = #tpu.dot_dimension_numbers<[1], [0], [0], [1], [0, 0, 1, 1], [], []>} : vector<8x32xbf16>, vector<32x16xbf16>, vector<8x16xf32> -> vector<8x16xf32>
    %c0_21 = arith.constant 0 : index
    %c0_22 = arith.constant 0 : index
    %c0_23 = arith.constant 0 : index
    %25 = vector.load %arg9[%c0_21, %c0_22, %c0_23] : memref<1x1x16xf32, #tpu.memory_space<vmem>>, vector<1x1x16xf32>
    %26 = vector.shape_cast %25 : vector<1x1x16xf32> to vector<1x16xf32>
    %27 = vector.broadcast %26 : vector<1x16xf32> to vector<8x16xf32>
    %28 = arith.addf %24, %27 : vector<8x16xf32>
    %29 = arith.truncf %14 : vector<8x16xf32> to vector<8x16xbf16>
    %30 = arith.truncf %21 : vector<8x16xf32> to vector<8x16xbf16>
    %cst_24 = arith.constant dense<0.000000e+00> : vector<8x8xf32>
    %31 = tpu.matmul %29, %30, %cst_24 {dimension_numbers = #tpu.dot_dimension_numbers<[1], [1], [0], [0], [0, 0, 1, 0], [], []>} : vector<8x16xbf16>, vector<8x16xbf16>, vector<8x8xf32> -> vector<8x8xf32>
    %32 = arith.index_cast %arg0 : i32 to index
    %33 = memref.load %arg2[%32] : memref<2xi32, #tpu.memory_space<smem>>
    %34 = tpu.iota {dimensions = array<i32: 1>} : vector<8x8xi32>
    %35 = vector.broadcast %33 : i32 to vector<8x8xi32>
    %36 = arith.cmpi slt, %34, %35 : vector<8x8xi32>
    %cst_25 = arith.constant -1.000000e+06 : f32
    %37 = vector.broadcast %cst_25 : f32 to vector<8x8xf32>
    %38 = arith.select %36, %31, %37 : vector<8x8xi1>, vector<8x8xf32>
    %cst_26 = arith.constant dense<0xFF800000> : vector<8xf32>
    %39 = vector.multi_reduction <maximumf>, %38, %cst_26 [1] : vector<8x8xf32> to vector<8xf32>
    %40 = vector.shape_cast %39 : vector<8xf32> to vector<8x1xf32>
    %41 = vector.broadcast %40 : vector<8x1xf32> to vector<8x8xf32>
    %42 = arith.subf %38, %41 : vector<8x8xf32>
    %43 = math.exp %42 : vector<8x8xf32>
    %cst_27 = arith.constant dense<0.000000e+00> : vector<8xf32>
    %44 = vector.multi_reduction <add>, %43, %cst_27 [1] : vector<8x8xf32> to vector<8xf32>
    %45 = vector.shape_cast %44 : vector<8xf32> to vector<8x1xf32>
    %46 = tpu.reciprocal %45 {approx = true} : vector<8x1xf32> -> vector<8x1xf32>
    %47 = vector.broadcast %46 : vector<8x1xf32> to vector<8x8xf32>
    %48 = arith.mulf %43, %47 : vector<8x8xf32>
    %49 = arith.truncf %48 : vector<8x8xf32> to vector<8x8xbf16>
    %50 = arith.truncf %28 : vector<8x16xf32> to vector<8x16xbf16>
    %cst_28 = arith.constant dense<0.000000e+00> : vector<8x16xf32>
    %51 = tpu.matmul %49, %50, %cst_28 {dimension_numbers = #tpu.dot_dimension_numbers<[1], [0], [0], [1], [0, 0, 1, 1], [], []>} : vector<8x8xbf16>, vector<8x16xbf16>, vector<8x16xf32> -> vector<8x16xf32>
    %c0_29 = arith.constant 0 : index
    %c0_30 = arith.constant 0 : index
    %52 = vector.load %arg15[%c0_29, %c0_30] : memref<8x32xf32, #tpu.memory_space<vmem>>, vector<8x32xf32>
    %53 = arith.truncf %51 : vector<8x16xf32> to vector<8x16xbf16>
    %c0_31 = arith.constant 0 : index
    %c0_32 = arith.constant 0 : index
    %c0_33 = arith.constant 0 : index
    %54 = vector.load %arg10[%c0_31, %c0_32, %c0_33] : memref<1x16x32xbf16, #tpu.memory_space<vmem>>, vector<1x16x32xbf16>
    %55 = vector.shape_cast %54 : vector<1x16x32xbf16> to vector<16x32xbf16>
    %cst_34 = arith.constant dense<0.000000e+00> : vector<8x32xf32>
    %56 = tpu.matmul %53, %55, %cst_34 {dimension_numbers = #tpu.dot_dimension_numbers<[1], [0], [0], [1], [0, 0, 1, 1], [], []>} : vector<8x16xbf16>, vector<16x32xbf16>, vector<8x32xf32> -> vector<8x32xf32>
    %57 = arith.addf %52, %56 : vector<8x32xf32>
    %c0_35 = arith.constant 0 : index
    %c0_36 = arith.constant 0 : index
    %58 = vector.load %arg15[%c0_35, %c0_36] : memref<8x32xf32, #tpu.memory_space<vmem>>, vector<8x32xf32>
    tpu.vector_store %arg15[%c0_35, %c0_36], %57 {strides = array<i32>} : memref<8x32xf32, #tpu.memory_space<vmem>>, vector<8x32xf32>,
    %c1_i32 = arith.constant 1 : i32
    %59 = arith.cmpi eq, %arg1, %c1_i32 : i32
    %60 = arith.extui %59 : i1 to i32
    %c0_i32_37 = arith.constant 0 : i32
    %61 = arith.cmpi ne, %60, %c0_i32_37 : i32
    scf.if %61 {
      %c0_38 = arith.constant 0 : index
      %c0_39 = arith.constant 0 : index
      %62 = vector.load %arg15[%c0_38, %c0_39] : memref<8x32xf32, #tpu.memory_space<vmem>>, vector<8x32xf32>
      %63 = arith.addf %1, %62 : vector<8x32xf32>
      %c0_40 = arith.constant 0 : index
      %c0_41 = arith.constant 0 : index
      %64 = vector.load %arg11[%c0_40, %c0_41] : memref<1x32xf32, #tpu.memory_space<vmem>>, vector<1x32xf32>
      %65 = vector.broadcast %64 : vector<1x32xf32> to vector<8x32xf32>
      %66 = arith.addf %63, %65 : vector<8x32xf32>
      %cst_42 = arith.constant dense<0.000000e+00> : vector<8xf32>
      %67 = vector.multi_reduction <add>, %66, %cst_42 [1] : vector<8x32xf32> to vector<8xf32>
      %68 = vector.shape_cast %67 : vector<8xf32> to vector<8x1xf32>
      %cst_43 = arith.constant 3.200000e+01 : f32
      %69 = vector.broadcast %cst_43 : f32 to vector<8x1xf32>
      %70 = arith.divf %68, %69 : vector<8x1xf32>
      %71 = vector.broadcast %70 : vector<8x1xf32> to vector<8x32xf32>
      %72 = arith.subf %66, %71 : vector<8x32xf32>
      %73 = vector.broadcast %70 : vector<8x1xf32> to vector<8x32xf32>
      %74 = arith.subf %66, %73 : vector<8x32xf32>
      %75 = arith.mulf %72, %74 : vector<8x32xf32>
      %cst_44 = arith.constant dense<0.000000e+00> : vector<8xf32>
      %76 = vector.multi_reduction <add>, %75, %cst_44 [1] : vector<8x32xf32> to vector<8xf32>
      %77 = vector.shape_cast %76 : vector<8xf32> to vector<8x1xf32>
      %cst_45 = arith.constant 3.200000e+01 : f32
      %78 = vector.broadcast %cst_45 : f32 to vector<8x1xf32>
      %79 = arith.divf %77, %78 : vector<8x1xf32>
      %80 = vector.broadcast %70 : vector<8x1xf32> to vector<8x32xf32>
      %81 = arith.subf %66, %80 : vector<8x32xf32>
      %cst_46 = arith.constant 9.99999974E-6 : f32
      %82 = vector.broadcast %cst_46 : f32 to vector<8x1xf32>
      %83 = arith.addf %79, %82 : vector<8x1xf32>
      %84 = math.rsqrt %83 : vector<8x1xf32>
      %85 = vector.broadcast %84 : vector<8x1xf32> to vector<8x32xf32>
      %86 = arith.mulf %81, %85 : vector<8x32xf32>
      %c0_47 = arith.constant 0 : index
      %c0_48 = arith.constant 0 : index
      %87 = vector.load %arg12[%c0_47, %c0_48] : memref<1x32xf32, #tpu.memory_space<vmem>>, vector<1x32xf32>
      %88 = vector.broadcast %87 : vector<1x32xf32> to vector<8x32xf32>
      %89 = arith.mulf %86, %88 : vector<8x32xf32>
      %c0_49 = arith.constant 0 : index
      %c0_50 = arith.constant 0 : index
      %90 = vector.load %arg13[%c0_49, %c0_50] : memref<1x32xf32, #tpu.memory_space<vmem>>, vector<1x32xf32>
      %91 = vector.broadcast %90 : vector<1x32xf32> to vector<8x32xf32>
      %92 = arith.addf %89, %91 : vector<8x32xf32>
      %c0_51 = arith.constant 0 : index
      %c0_52 = arith.constant 0 : index
      %c0_53 = arith.constant 0 : index
      %93 = vector.load %arg14[%c0_51, %c0_52, %c0_53] : memref<1x8x32xf32, #tpu.memory_space<vmem>>, vector<1x8x32xf32>
      %94 = vector.shape_cast %93 : vector<1x8x32xf32> to vector<8x32xf32>
      %95 = vector.shape_cast %92 : vector<8x32xf32> to vector<1x8x32xf32>
      tpu.vector_store %arg14[%c0_51, %c0_52, %c0_53], %95 {strides = array<i32>} : memref<1x8x32xf32, #tpu.memory_space<vmem>>, vector<1x8x32xf32>,
    } else {
    }
    return
  }
  func.func @transform_0(%arg0: i32, %arg1: i32, %arg2: memref<2xi32, #tpu.memory_space<smem>>) -> (i32, i32, i32) {
    %c0_i32 = arith.constant 0 : i32
    %c0_i32_0 = arith.constant 0 : i32
    %c0_i32_1 = arith.constant 0 : i32
    return %arg0, %c0_i32, %c0_i32_0 : i32, i32, i32
  }
  func.func @transform_1(%arg0: i32, %arg1: i32, %arg2: memref<2xi32, #tpu.memory_space<smem>>) -> (i32, i32, i32) {
    %c0_i32 = arith.constant 0 : i32
    %c0_i32_0 = arith.constant 0 : i32
    %c0_i32_1 = arith.constant 0 : i32
    return %arg1, %c0_i32, %c0_i32_0 : i32, i32, i32
  }
  func.func @transform_2(%arg0: i32, %arg1: i32, %arg2: memref<2xi32, #tpu.memory_space<smem>>) -> (i32, i32, i32) {
    %c0_i32 = arith.constant 0 : i32
    %c0_i32_0 = arith.constant 0 : i32
    %c0_i32_1 = arith.constant 0 : i32
    return %arg1, %c0_i32, %c0_i32_0 : i32, i32, i32
  }
  func.func @transform_3(%arg0: i32, %arg1: i32, %arg2: memref<2xi32, #tpu.memory_space<smem>>) -> (i32, i32, i32) {
    %c0_i32 = arith.constant 0 : i32
    %c0_i32_0 = arith.constant 0 : i32
    %c0_i32_1 = arith.constant 0 : i32
    return %arg1, %c0_i32, %c0_i32_0 : i32, i32, i32
  }
  func.func @transform_4(%arg0: i32, %arg1: i32, %arg2: memref<2xi32, #tpu.memory_space<smem>>) -> (i32, i32, i32) {
    %c0_i32 = arith.constant 0 : i32
    %c0_i32_0 = arith.constant 0 : i32
    %c0_i32_1 = arith.constant 0 : i32
    return %arg1, %c0_i32, %c0_i32_0 : i32, i32, i32
  }
  func.func @transform_5(%arg0: i32, %arg1: i32, %arg2: memref<2xi32, #tpu.memory_space<smem>>) -> (i32, i32, i32) {
    %c0_i32 = arith.constant 0 : i32
    %c0_i32_0 = arith.constant 0 : i32
    %c0_i32_1 = arith.constant 0 : i32
    return %arg1, %c0_i32, %c0_i32_0 : i32, i32, i32
  }
  func.func @transform_6(%arg0: i32, %arg1: i32, %arg2: memref<2xi32, #tpu.memory_space<smem>>) -> (i32, i32, i32) {
    %c0_i32 = arith.constant 0 : i32
    %c0_i32_0 = arith.constant 0 : i32
    %c0_i32_1 = arith.constant 0 : i32
    return %arg1, %c0_i32, %c0_i32_0 : i32, i32, i32
  }
  func.func @transform_7(%arg0: i32, %arg1: i32, %arg2: memref<2xi32, #tpu.memory_space<smem>>) -> (i32, i32, i32) {
    %c0_i32 = arith.constant 0 : i32
    %c0_i32_0 = arith.constant 0 : i32
    %c0_i32_1 = arith.constant 0 : i32
    return %arg1, %c0_i32, %c0_i32_0 : i32, i32, i32
  }
  func.func @transform_8(%arg0: i32, %arg1: i32, %arg2: memref<2xi32, #tpu.memory_space<smem>>) -> (i32, i32) {
    %c0_i32 = arith.constant 0 : i32
    %c0_i32_0 = arith.constant 0 : i32
    %c0_i32_1 = arith.constant 0 : i32
    return %c0_i32, %c0_i32_0 : i32, i32
  }
  func.func @transform_9(%arg0: i32, %arg1: i32, %arg2: memref<2xi32, #tpu.memory_space<smem>>) -> (i32, i32) {
    %c0_i32 = arith.constant 0 : i32
    %c0_i32_0 = arith.constant 0 : i32
    %c0_i32_1 = arith.constant 0 : i32
    return %c0_i32, %c0_i32_0 : i32, i32
  }
  func.func @transform_10(%arg0: i32, %arg1: i32, %arg2: memref<2xi32, #tpu.memory_space<smem>>) -> (i32, i32) {
    %c0_i32 = arith.constant 0 : i32
    %c0_i32_0 = arith.constant 0 : i32
    %c0_i32_1 = arith.constant 0 : i32
    return %c0_i32, %c0_i32_0 : i32, i32
  }
  func.func @transform_11(%arg0: i32, %arg1: i32, %arg2: memref<2xi32, #tpu.memory_space<smem>>) -> (i32, i32, i32) {
    %c0_i32 = arith.constant 0 : i32
    %c0_i32_0 = arith.constant 0 : i32
    %c0_i32_1 = arith.constant 0 : i32
    return %arg0, %c0_i32, %c0_i32_0 : i32, i32, i32
  }
}

module attributes {stable_mosaic.version = 11 : i64} {
  func.func @_ffn_addnorm_kernel(%arg0: i32, %arg1: memref<16x32xf32, #tpu.memory_space<vmem>>, %arg2: memref<32x64xbf16, #tpu.memory_space<vmem>>, %arg3: memref<1x64xf32, #tpu.memory_space<vmem>>, %arg4: memref<64x32xbf16, #tpu.memory_space<vmem>>, %arg5: memref<1x32xf32, #tpu.memory_space<vmem>>, %arg6: memref<1x32xf32, #tpu.memory_space<vmem>>, %arg7: memref<1x32xf32, #tpu.memory_space<vmem>>, %arg8: memref<16x32xf32, #tpu.memory_space<vmem>>) attributes {dimension_semantics = [#tpu.dimension_semantics<parallel>], iteration_bounds = array<i64: 1>, scalar_prefetch = 0 : i64, scratch_operands = 0 : i64, tpu.core_type = #tpu.core_type<tc>, window_params = [{transform_indices = @transform_0, window_bounds = array<i64: 16, 32>}, {pipeline_mode = #tpu.pipeline_mode<synchronous>, transform_indices = @transform_1, window_bounds = array<i64: 32, 64>}, {pipeline_mode = #tpu.pipeline_mode<synchronous>, transform_indices = @transform_2, window_bounds = array<i64: 1, 64>}, {pipeline_mode = #tpu.pipeline_mode<synchronous>, transform_indices = @transform_3, window_bounds = array<i64: 64, 32>}, {pipeline_mode = #tpu.pipeline_mode<synchronous>, transform_indices = @transform_4, window_bounds = array<i64: 1, 32>}, {pipeline_mode = #tpu.pipeline_mode<synchronous>, transform_indices = @transform_5, window_bounds = array<i64: 1, 32>}, {pipeline_mode = #tpu.pipeline_mode<synchronous>, transform_indices = @transform_6, window_bounds = array<i64: 1, 32>}, {transform_indices = @transform_7, window_bounds = array<i64: 16, 32>}]} {
    %c0 = arith.constant 0 : index
    %c0_0 = arith.constant 0 : index
    %0 = vector.load %arg1[%c0, %c0_0] : memref<16x32xf32, #tpu.memory_space<vmem>>, vector<16x32xf32>
    %1 = arith.truncf %0 : vector<16x32xf32> to vector<16x32xbf16>
    %c0_1 = arith.constant 0 : index
    %c0_2 = arith.constant 0 : index
    %2 = vector.load %arg2[%c0_1, %c0_2] : memref<32x64xbf16, #tpu.memory_space<vmem>>, vector<32x64xbf16>
    %cst = arith.constant dense<0.000000e+00> : vector<16x64xf32>
    %3 = tpu.matmul %1, %2, %cst {dimension_numbers = #tpu.dot_dimension_numbers<[1], [0], [0], [1], [0, 0, 1, 1], [], []>} : vector<16x32xbf16>, vector<32x64xbf16>, vector<16x64xf32> -> vector<16x64xf32>
    %c0_3 = arith.constant 0 : index
    %c0_4 = arith.constant 0 : index
    %4 = vector.load %arg3[%c0_3, %c0_4] : memref<1x64xf32, #tpu.memory_space<vmem>>, vector<1x64xf32>
    %5 = vector.broadcast %4 : vector<1x64xf32> to vector<16x64xf32>
    %6 = arith.addf %3, %5 : vector<16x64xf32>
    %cst_5 = arith.constant 0.000000e+00 : f32
    %7 = vector.broadcast %cst_5 : f32 to vector<16x64xf32>
    %8 = arith.maximumf %6, %7 : vector<16x64xf32>
    %9 = arith.truncf %8 : vector<16x64xf32> to vector<16x64xbf16>
    %c0_6 = arith.constant 0 : index
    %c0_7 = arith.constant 0 : index
    %10 = vector.load %arg4[%c0_6, %c0_7] : memref<64x32xbf16, #tpu.memory_space<vmem>>, vector<64x32xbf16>
    %cst_8 = arith.constant dense<0.000000e+00> : vector<16x32xf32>
    %11 = tpu.matmul %9, %10, %cst_8 {dimension_numbers = #tpu.dot_dimension_numbers<[1], [0], [0], [1], [0, 0, 1, 1], [], []>} : vector<16x64xbf16>, vector<64x32xbf16>, vector<16x32xf32> -> vector<16x32xf32>
    %c0_9 = arith.constant 0 : index
    %c0_10 = arith.constant 0 : index
    %12 = vector.load %arg5[%c0_9, %c0_10] : memref<1x32xf32, #tpu.memory_space<vmem>>, vector<1x32xf32>
    %13 = vector.broadcast %12 : vector<1x32xf32> to vector<16x32xf32>
    %14 = arith.addf %11, %13 : vector<16x32xf32>
    %15 = arith.addf %0, %14 : vector<16x32xf32>
    %cst_11 = arith.constant dense<0.000000e+00> : vector<16xf32>
    %16 = vector.multi_reduction <add>, %15, %cst_11 [1] : vector<16x32xf32> to vector<16xf32>
    %17 = vector.shape_cast %16 : vector<16xf32> to vector<16x1xf32>
    %cst_12 = arith.constant 3.200000e+01 : f32
    %18 = vector.broadcast %cst_12 : f32 to vector<16x1xf32>
    %19 = arith.divf %17, %18 : vector<16x1xf32>
    %20 = vector.broadcast %19 : vector<16x1xf32> to vector<16x32xf32>
    %21 = arith.subf %15, %20 : vector<16x32xf32>
    %22 = vector.broadcast %19 : vector<16x1xf32> to vector<16x32xf32>
    %23 = arith.subf %15, %22 : vector<16x32xf32>
    %24 = arith.mulf %21, %23 : vector<16x32xf32>
    %cst_13 = arith.constant dense<0.000000e+00> : vector<16xf32>
    %25 = vector.multi_reduction <add>, %24, %cst_13 [1] : vector<16x32xf32> to vector<16xf32>
    %26 = vector.shape_cast %25 : vector<16xf32> to vector<16x1xf32>
    %cst_14 = arith.constant 3.200000e+01 : f32
    %27 = vector.broadcast %cst_14 : f32 to vector<16x1xf32>
    %28 = arith.divf %26, %27 : vector<16x1xf32>
    %29 = vector.broadcast %19 : vector<16x1xf32> to vector<16x32xf32>
    %30 = arith.subf %15, %29 : vector<16x32xf32>
    %cst_15 = arith.constant 9.99999974E-6 : f32
    %31 = vector.broadcast %cst_15 : f32 to vector<16x1xf32>
    %32 = arith.addf %28, %31 : vector<16x1xf32>
    %33 = math.rsqrt %32 : vector<16x1xf32>
    %34 = vector.broadcast %33 : vector<16x1xf32> to vector<16x32xf32>
    %35 = arith.mulf %30, %34 : vector<16x32xf32>
    %c0_16 = arith.constant 0 : index
    %c0_17 = arith.constant 0 : index
    %36 = vector.load %arg6[%c0_16, %c0_17] : memref<1x32xf32, #tpu.memory_space<vmem>>, vector<1x32xf32>
    %37 = vector.broadcast %36 : vector<1x32xf32> to vector<16x32xf32>
    %38 = arith.mulf %35, %37 : vector<16x32xf32>
    %c0_18 = arith.constant 0 : index
    %c0_19 = arith.constant 0 : index
    %39 = vector.load %arg7[%c0_18, %c0_19] : memref<1x32xf32, #tpu.memory_space<vmem>>, vector<1x32xf32>
    %40 = vector.broadcast %39 : vector<1x32xf32> to vector<16x32xf32>
    %41 = arith.addf %38, %40 : vector<16x32xf32>
    %c0_20 = arith.constant 0 : index
    %c0_21 = arith.constant 0 : index
    %42 = vector.load %arg8[%c0_20, %c0_21] : memref<16x32xf32, #tpu.memory_space<vmem>>, vector<16x32xf32>
    tpu.vector_store %arg8[%c0_20, %c0_21], %41 {strides = array<i32>} : memref<16x32xf32, #tpu.memory_space<vmem>>, vector<16x32xf32>,
    return
  }
  func.func @transform_0(%arg0: i32) -> (i32, i32) {
    %c0_i32 = arith.constant 0 : i32
    %c0_i32_0 = arith.constant 0 : i32
    return %arg0, %c0_i32 : i32, i32
  }
  func.func @transform_1(%arg0: i32) -> (i32, i32) {
    %c0_i32 = arith.constant 0 : i32
    %c0_i32_0 = arith.constant 0 : i32
    %c0_i32_1 = arith.constant 0 : i32
    return %c0_i32, %c0_i32_0 : i32, i32
  }
  func.func @transform_2(%arg0: i32) -> (i32, i32) {
    %c0_i32 = arith.constant 0 : i32
    %c0_i32_0 = arith.constant 0 : i32
    %c0_i32_1 = arith.constant 0 : i32
    return %c0_i32, %c0_i32_0 : i32, i32
  }
  func.func @transform_3(%arg0: i32) -> (i32, i32) {
    %c0_i32 = arith.constant 0 : i32
    %c0_i32_0 = arith.constant 0 : i32
    %c0_i32_1 = arith.constant 0 : i32
    return %c0_i32, %c0_i32_0 : i32, i32
  }
  func.func @transform_4(%arg0: i32) -> (i32, i32) {
    %c0_i32 = arith.constant 0 : i32
    %c0_i32_0 = arith.constant 0 : i32
    %c0_i32_1 = arith.constant 0 : i32
    return %c0_i32, %c0_i32_0 : i32, i32
  }
  func.func @transform_5(%arg0: i32) -> (i32, i32) {
    %c0_i32 = arith.constant 0 : i32
    %c0_i32_0 = arith.constant 0 : i32
    %c0_i32_1 = arith.constant 0 : i32
    return %c0_i32, %c0_i32_0 : i32, i32
  }
  func.func @transform_6(%arg0: i32) -> (i32, i32) {
    %c0_i32 = arith.constant 0 : i32
    %c0_i32_0 = arith.constant 0 : i32
    %c0_i32_1 = arith.constant 0 : i32
    return %c0_i32, %c0_i32_0 : i32, i32
  }
  func.func @transform_7(%arg0: i32) -> (i32, i32) {
    %c0_i32 = arith.constant 0 : i32
    %c0_i32_0 = arith.constant 0 : i32
    return %arg0, %c0_i32 : i32, i32
  }
}

</mosaic_0001>

<bundles_post_ra>
// kernel: tpu_custom_call.1
= control target key start
LH: loop header
LB: loop body
LE: loop exit
PB: predicated region body
PF: predicated region fallthrough
CT: control target
= control target key end

     0   :  { %6 = vsyncpa [#allocation3], 0  ;;  %s481_s0 = inlined_call_operand.hbm [shape: f32[8,128], index: 0, kind: input, shape index: {}]   ;;  %s482_s1 = inlined_call_operand.hbm [shape: f32[16,128], index: 1, kind: output, shape index: {}]  }
   0x1   :  { %7 = vsyncpa [#allocation4], 0 }
   0x2   :  { %9 = vsyncpa [#allocation4 + $0x1], 0  ;;  %s351_s6 = smov 0   ;;  %s353_s7 = smov 0  }
   0x3   :  { %s355_s8 = smov 0   ;;  %s357_s9 = smov 0  }
   0x4 LB: > { %s372_s10 = sadd.s32 4294967295, %s337_s9   ;;  %s183_s11 = sadd.s32 4294967294, %s337_s9   ;;  %s337_s9 = sphi %s357_s9, %s498_s9   ;;  %s333_s8 = sphi %s355_s8, %s497_s8   ;;  %s329_s7 = sphi %s353_s7, %s496_s7   ;;  %s325_s6 = sphi %s351_s6, %s495_s6  }
   0x5   : > { %s376_s12 = sadd.s32 1, %s337_s9   ;;  %s43_s13 = sadd.s32 1, %s333_s8 }
   0x6   : > { %s40_s14 = ssub.s32 %s337_s9, %s376_s12  ;;  %p53_p0 = scmp.ne.s32.totalorder %s333_s8, %s329_s7 }
   0x7   : > { %p41_p1 = scmp.eq.s32.totalorder %s40_s14, 0  ;;  %p54_p2 = scmp.eq.s32.totalorder %s372_s10, 1 }
   0x8   : > { %p59_p3 = scmp.ne.s32.totalorder %s329_s7, %s325_s6  ;;  %p60_p4 = scmp.eq.s32.totalorder %s183_s11, 1 }
   0x9   : > { %s387_s15 = scalar_select %p41_p1, %s333_s8, %s43_s13  }
   0xa   : > { %p389_p5 = por %p54_p2, %p53_p0  ;;  %p393_p6 = por %p60_p4, %p59_p3 }
   0xb   : > { %p184_p7 = scmp.ge.s32.totalorder %s337_s9, 1  ;;  %p67_p8 = scmp.lt.s32.totalorder %s337_s9, 3 }
   0xc   : > { %s486_s16 = scalar_select %p389_p5, 1, 0 }
   0xd   : > { %s487_s17 = scalar_select %p393_p6, 1, 0 }
   0xe   : > { %p483_p9 = scmp.eq.s32.totalorder %s372_s10, 0  ;;  %p400_p10 = pnand %p184_p7, %p67_p8 }
   0xf   : > { %s339_s19 = smov [#allocation2]   ;;  %s243_s24 = scalar_lea.hbm %s481_s0, 128 }
  0x10   : > { %s488_s18 = scalar_select %p400_p10, 1, 0 }
  0x11   : > { %s80_s20 = sshll.u32 %s339_s19, 4  ;;  %p199_p11 = pneg %p400_p10  ;;  %s81_s20 = int_to_ptr.vmem [resolvable:$true] %s80_s20 }
  0x12   : > { %p244_p13 = scmp.ne.s32.totalorder %s481_s0, %s243_s24  ;;  %p250_p3 = scmp.lt.u32.totalorder %s243_s24, %s481_s0 }
  0x13   : > { %p408_p12 = pnand %p483_p9, %p199_p11 }
  0x15   : > { %p245_p0 = pneg %p408_p12 }
  0x17   : > { %p246_p1 = pnand %p245_p0, %p244_p13 }
  0x19   : > { %p247_p2 = pneg %p246_p1 }
  0x1b   : > { %p252_p4 = pnand %p250_p3, %p247_p2 }
  0x1d   : > { %255 = shalt.err (!%p252_p4)
}
  0x1e   : > { %s256_s29 = scalar_lea.vmem %s81_s20, 128  ;;  %p264_p9 = scmp.lt.s32.totalorder %s81_s20, %s81_s20 }
  0x1f   : > { %p257_p7 = scmp.ne.s32.totalorder %s81_s20, %s256_s29  ;;  %p265_p6 = scmp.lt.s32.totalorder %s256_s29, %s256_s29 }
  0x21   : > { %p259_p8 = pnand %p257_p7, %p245_p0  ;;  %p266_p5 = por %p265_p6, %p264_p9 }
  0x23   : > { %p260_p11 = pneg %p259_p8 }
  0x25   : > { %p267_p10 = pnand %p266_p5, %p260_p11 }
  0x27   : > { %270 = shalt.err (!%p267_p10)
}
  0x28   : > { %202 = dma.hbm_to_vmem [thread:$0]  (!%p408_p12), %s481_s0, 128, %s81_s20, [#allocation3]  }
  0x29   : > { %p490_p13 = scmp.ne.s32.totalorder %s488_s18, 0 }
  0x2a   : > { %p491_p1 = scmp.eq.s32.totalorder (!%p490_p13), %s372_s10, 0 }
  0x2b   : > { %93 = sbr.rel (%p490_p13) target bundleno = 77 (0x4d), region = 24 }
  0x32   : > { %316 = dma.done.wait (%p491_p1), [#allocation3], 128   ;;  %p492_p0 = pmov %p491_p1 }
  0x33   : > { %s105_s3 = sand.u32 1, %s329_s7   ;;  %s190_s13 = sshll.u32 %s372_s10, 7  ;;  %v108_v0 = vld [vmem:[#allocation2] sm:$0xff] }
  0x34   : > { %318 = vsyncadd (%p492_p0), [#allocation3], 4294967168  ;;  %s188_s4 = sshll.u32 %s105_s3, 3  ;;  %s441_s18 = scalar_lea.hbm %s482_s1, %s190_s13 }
  0x35   : > { %s107_s5 = scalar_lea.vmem [#allocation5], %s188_s4  ;;  %s111_s20 = scalar_lea.sflag [#allocation4], %s105_s3 }
  0x36   : > { %s124_s11 = sshll.u32 %s107_s5, 4  ;;  %109 = vst [vmem:[%s107_s5] sm:$0xff] %v108_v0  ;;  %p493_p6 = scmp.ne.s32.totalorder %s486_s16, 0  ;;  %s436_s11 = int_to_ptr.vmem [resolvable:$true] %s124_s11 }
  0x37   : > { %s271_s21 = scalar_lea.vmem %s436_s11, 128  ;;  %s340_s22 = smov [#allocation5]  }
  0x38   : > { %p272_p5 = scmp.ne.s32.totalorder %s436_s11, %s271_s21  ;;  %s275_s10 = sshll.u32 %s340_s22, 4  ;;  %s276_s10 = int_to_ptr.vmem [resolvable:$false] %s275_s10 }
  0x39   : > { %s277_s23 = scalar_lea.vmem %s276_s10, 256  ;;  %p278_p12 = scmp.lt.s32.totalorder %s436_s11, %s276_s10 }
  0x3a   : > { %p273_p9 = pnand %p272_p5, %p493_p6  ;;  %p279_p2 = scmp.lt.s32.totalorder %s277_s23, %s271_s21 }
  0x3c   : > { %p274_p10 = pneg %p273_p9  ;;  %p280_p3 = por %p279_p2, %p278_p12 }
  0x3e   : > { %p281_p4 = pnand %p280_p3, %p274_p10 }
  0x40   : > { %284 = shalt.err (!%p281_p4)
}
  0x41   : > { %s285_s24 = scalar_lea.hbm %s441_s18, 128  ;;  %s289_s27 = scalar_lea.hbm %s482_s1, 256 }
  0x42   : > { %p286_p7 = scmp.ne.s32.totalorder %s441_s18, %s285_s24  ;;  %p290_p13 = scmp.lt.u32.totalorder %s441_s18, %s482_s1 }
  0x43   : > { %p291_p1 = scmp.lt.u32.totalorder %s289_s27, %s285_s24  ;;  %p293_p5 = scmp.lt.u32.totalorder %s285_s24, %s441_s18 }
  0x44   : > { %p287_p8 = pnand %p286_p7, %p493_p6 }
  0x45   : > { %p292_p0 = por %p291_p1, %p290_p13 }
  0x46   : > { %p288_p11 = pneg %p287_p8 }
  0x47   : > { %p294_p9 = por %p293_p5, %p292_p0 }
  0x49   : > { %p295_p10 = pnand %p294_p9, %p288_p11 }
  0x4b   : > { %298 = shalt.err (!%p295_p10)
}
  0x4c   : > { %197 = dma.vmem_to_hbm [thread:$0]  (%p493_p6), %s436_s11, 128, %s441_s18, %s111_s20  }
  0x4d PF: > { %p209_p12 = scmp.ge.s32.totalorder %s337_s9, 2  ;;  %s136_s30 = sand.u32 1, %s325_s6  }
  0x4e   : > { %p494_p2 = scmp.ne.s32.totalorder %s487_s17, 0  ;;  %s137_s2 = scalar_lea.sflag [#allocation4], %s136_s30 }
  0x50   : > { %p204_p3 = pnand %p209_p12, %p494_p2 }
  0x52   : > { %320 = dma.done.wait (!%p204_p3), %s137_s2, 128  }
  0x53   : > { %322 = vsyncadd (!%p204_p3), %s137_s2, 4294967168  ;;  %p12_p4 = scmp.ge.s32.totalorder %s376_s12, 4   ;;  %s495_s6 = smov %s329_s7 }
  0x54   : > { %s496_s7 = smov %s333_s8  ;;  %s497_s8 = smov %s387_s15 }
  0x55   : > { %s498_s9 = smov %s376_s12  ;;  %14 = sbr.rel (!%p12_p4) target bundleno = 4 (0x4), region = 61 }
  0x5c   :  { %142 = vsyncpa [#allocation3], 1 }
  0x5d   :  { %144 = vsyncpa [#allocation3 + $0x1], 1 }
  0x5e   :  { %145 = vsyncpa [#allocation4], 1 }
  0x5f   :  { %147 = vsyncpa [#allocation4 + $0x1], 1 }

// kernel: bert_encoder_forward.7
= control target key start
LH: loop header
LB: loop body
LE: loop exit
PB: predicated region body
PF: predicated region fallthrough
CT: control target
= control target key end

     0   :  { %v330_v1 = vmov 0.0   ;;  %vm331_vm0 = vmmov 0   ;;  %vm54_vm1 = vcmask 261120   ;;  %s430_s0 = inlined_call_operand.vmem [shape: f32[16,32], index: 0, kind: input, shape index: {}]   ;;  %s431_s1 = inlined_call_operand.vmem [shape: bf16[32,64], index: 1, kind: input, shape index: {}]   ;;  %s432_s2 = inlined_call_operand.vmem [shape: f32[1,64], index: 2, kind: input, shape index: {}]   ;;  %s433_s3 = inlined_call_operand.vmem [shape: bf16[64,32], index: 3, kind: input, shape index: {}]   ;;  %s434_s4 = inlined_call_operand.vmem [shape: f32[1,32], index: 4, kind: input, shape index: {}]   ;;  %s435_s5 = inlined_call_operand.vmem [shape: f32[1,32], index: 5, kind: input, shape index: {}]   ;;  %s436_s6 = inlined_call_operand.vmem [shape: f32[1,32], index: 6, kind: input, shape index: {}]   ;;  %s437_s7 = inlined_call_operand.hbm [shape: f32[16,32], index: 7, kind: output, shape index: {}]  }
   0x1   :  { %v296_v0 = vld [vmem:[%s431_s1] sm:$0xff]   ;;  %271 = vmatprep.subr.bf16.mxu0 %v330_v1  ;;  %v297_v2 = vld [vmem:[%s431_s1 + $0x8] sm:$0xff]   ;;  %279 = vmatprep.subr.bf16.mxu1 %v330_v1 }
   0x2   :  { %272 = vmatpush3.bf16.msra.mxu0 %v296_v0  ;;  %275 = vmatprep.mubr.msk.bf16.mxu0 %vm331_vm0, %v330_v1  ;;  %v28_v3 = vld [vmem:[%s430_s0] sm:$0xff]  ;;  %v29_v4 = vld [vmem:[%s430_s0 + $0x8] sm:$0xff] }
   0x3   :  { %273 = vmatprep.subr.bf16.mxu0 %v330_v1  ;;  %v298_v5 = vld [vmem:[%s433_s3] sm:$0xff]   ;;  %287 = vmatprep.mubr.msk.bf16.mxu1 %vm331_vm0, %v330_v1  ;;  %v299_v6 = vld [vmem:[%s433_s3 + $0x8] sm:$0xff]   ;;  %v30_v7 = vpack.c.bf16 %v29_v4, %v28_v3 }
   0x4   :  { %280 = vmatpush3.bf16.msra.mxu1 %v298_v5 }
   0x5   :  { %281 = vmatprep.subr.bf16.mxu1 %v330_v1 }
   0x6   :  { %274 = vmatpush3.bf16.msra.mxu0 %v297_v2 }
   0x7   :  { %12 = vsyncpa [#allocation3], 0  ;;  %v300_v8 = vld [vmem:[%s433_s3 + $0x10] sm:$0xff]   ;;  %v301_v9 = vld [vmem:[%s433_s3 + $0x18] sm:$0xff]   ;;  %vm141_vm2 = vcmask 523264   ;;  %s332_s20 = smov [#allocation2]  }
   0x8   :  { %282 = vmatpush3.bf16.msra.mxu1 %v299_v6  ;;  %v251_v10 = vld [vmem:[%s432_s2] ss:$0 sm:$0xff]  ;;  %s240_s21 = sshll.u32 %s332_s20, 4  ;;  %s241_s21 = int_to_ptr.vmem [resolvable:$true] %s240_s21 }
   0x9   :  { %276 = vmatmul.mubr.msk.bf16.vlgmr.msra.gmra.mrb[0].mxu0 %vm54_vm1, %v30_v7  ;;  %283 = vmatprep.subr.bf16.mxu1 %v330_v1  ;;  %v255_v20 = vld [vmem:[%s434_s4] ss:$0 sm:$0xff]  ;;  %s306_s22 = scalar_lea.vmem %s241_s21, 256  ;;  %p311_p1 = scmp.lt.s32.totalorder %s241_s21, %s241_s21 }
   0xa   :  { %v261_v48 = vld [vmem:[%s435_s5] ss:$0 sm:$0xff]  ;;  %p307_p0 = scmp.ne.s32.totalorder %s241_s21, %s306_s22  ;;  %p312_p2 = scmp.lt.s32.totalorder %s306_s22, %s306_s22 }
   0xb   :  { %v262_v50 = vld [vmem:[%s436_s6] ss:$0 sm:$0xff] }
   0xc   :  { %284 = vmatpush3.bf16.msra.mxu1 %v300_v8  ;;  %p313_p3 = por %p312_p2, %p311_p1 }
   0xd   :  { %285 = vmatprep.subr.bf16.mxu1 %v330_v1 }
   0xe   :  { %p314_p4 = pnand %p313_p3, %p307_p0 }
  0x10   :  { %286 = vmatpush3.bf16.msra.mxu1 %v301_v9 }
  0xdc   :  { %v92_v11 = vpop.f32.mrb[0].mxu0 }
  0xdd   :  { %v93_v12 = vadd.f32 %v251_v10, %v92_v11  ;;  %v277_v13 = vpop.f32.mrb[1].mxu0 }
  0xde   :  { %v95_v14 = vpop.f32.mrb[2].mxu0 }
  0xdf   :  { %v96_v15 = vadd.f32 %v251_v10, %v95_v14  ;;  %v278_v16 = vpop.f32.mrb[3].mxu0  ;;  %v99_v17 = vmax.f32 %v93_v12, 0.0 }
  0xe1   :  { %v100_v18 = vmax.f32 %v96_v15, 0.0 }
  0xe3   :  { %v101_v19 = vpack.c.bf16 %v100_v18, %v99_v17 }
  0xe5   :  { %288 = vmatmul.mubr.msk.bf16.vlgmr.msra.gmra.mrb[0].mxu1 %vm141_vm2, %v101_v19 }
 0x1b8   :  { %v179_v21 = vpop.f32.mrb[0].mxu1 }
 0x1b9   :  { %v180_v22 = vadd.f32 %v255_v20, %v179_v21  ;;  %v289_v23 = vpop.f32.mrb[1].mxu1 }
 0x1ba   :  { %v182_v24 = vpop.f32.mrb[2].mxu1 }
 0x1bb   :  { %v183_v25 = vadd.f32 %v255_v20, %v182_v24  ;;  %v290_v26 = vpop.f32.mrb[3].mxu1  ;;  %v186_v27 = vadd.f32 %v180_v22, %v28_v3 }
 0x1bd   :  { %v188_v28 = vsel %vm54_vm1, %v186_v27, 0.0  ;;  %v187_v29 = vadd.f32 %v183_v25, %v29_v4 }
 0x1be   :  { %189 = vadd.xlane.f32.xlu0 %v188_v28 }
 0x1bf   :  { %v191_v30 = vsel %vm54_vm1, %v187_v29, 0.0 }
 0x1c2   :  { %192 = vadd.xlane.f32.xlu0 %v191_v30 }
 0x24b   :  { %v190_v31 = vpop.xlane.xlu0 %189 }
 0x24c   :  { %v195_v32 = vmul.f32 0.03125, %v190_v31 }
 0x24e   :  { %v197_v33 = vsub.f32 %v186_v27, %v195_v32 }
 0x24f   :  { %v193_v34 = vpop.xlane.xlu0 %192 }
 0x250   :  { %v196_v35 = vmul.f32 0.03125, %v193_v34  ;;  %v199_v36 = vmul.f32 %v197_v33, %v197_v33 }
 0x252   :  { %v198_v37 = vsub.f32 %v187_v29, %v196_v35  ;;  %v201_v38 = vsel %vm54_vm1, %v199_v36, 0.0 }
 0x253   :  { %202 = vadd.xlane.f32.xlu1 %v201_v38 }
 0x254   :  { %v200_v39 = vmul.f32 %v198_v37, %v198_v37 }
 0x256   :  { %v204_v40 = vsel %vm54_vm1, %v200_v39, 0.0 }
 0x257   :  { %205 = vadd.xlane.f32.xlu1 %v204_v40 }
 0x2e0   :  { %v203_v41 = vpop.xlane.xlu1 %202 }
 0x2e1   :  { %v207_v42 = vmul.f32 0.03125, %v203_v41 }
 0x2e3   :  { %v209_v43 = vadd.f32 1e-05, %v207_v42 }
 0x2e4   :  { %v206_v44 = vpop.xlane.xlu1 %205 }
 0x2e5   :  { %302 = vrsqrt.f32 %v209_v43  ;;  %v208_v45 = vmul.f32 0.03125, %v206_v44 }
 0x2e7   :  { %v210_v46 = vadd.f32 1e-05, %v208_v45 }
 0x2e9   :  { %304 = vrsqrt.f32 %v210_v46 }
 0x2ef   :  { %v303_v47 = vpop.eup %302 }
 0x2f0   :  { %v213_v49 = vmul.f32 %v303_v47, %v197_v33 }
 0x2f2   :  { %v222_v51 = vmul.f32 %v261_v48, %v213_v49 }
 0x2f3   :  { %v305_v52 = vpop.eup %304 }
 0x2f4   :  { %v214_v53 = vmul.f32 %v305_v52, %v198_v37  ;;  %v231_v54 = vadd.f32 %v262_v50, %v222_v51 }
 0x2f6   :  { %v223_v55 = vmul.f32 %v261_v48, %v214_v53  ;;  %233 = vst.msk [vmem:[#allocation2] sm:$0xff] %vm54_vm1, %v231_v54 }
 0x2f8   :  { %v232_v56 = vadd.f32 %v262_v50, %v223_v55 }
 0x2fa   :  { %234 = vst.msk [vmem:[#allocation2 + $0x8] sm:$0xff] %vm54_vm1, %v232_v56 }
 0x2fb   :  { %317 = shalt.err (!%p314_p4)
}
 0x2fc   :  { %s318_s23 = scalar_lea.hbm %s437_s7, 256 }
 0x2fd   :  { %p319_p5 = scmp.ne.s32.totalorder %s437_s7, %s318_s23  ;;  %p322_p6 = scmp.lt.u32.totalorder %s318_s23, %s437_s7 }
 0x2ff   :  { %p324_p7 = pnand %p322_p6, %p319_p5 }
 0x301   :  { %327 = shalt.err (!%p324_p7)
}
 0x302   :  { %s333_s28 = smov 128   ;;  %s334_s29 = smov 8  }
 0x303   :  { %246 = dma.vmem_to_hbm [thread:$0]  %s241_s21, 256, %s437_s7, [#allocation3], %s333_s28, %s333_s28, %s334_s29  }
 0x304   :  { %328 = dma.done.wait [#allocation3], 256  }
 0x305   :  { %329 = vsyncadd [#allocation3], 4294967040 }
 0x306   :  { %250 = vsyncpa [#allocation3], 1 }

// kernel: bert_encoder_forward.5
= control target key start
LH: loop header
LB: loop body
LE: loop exit
PB: predicated region body
PF: predicated region fallthrough
CT: control target
= control target key end

     0   :  { %v290_v0 = vmov 0.0   ;;  %vm291_vm0 = vmmov 0   ;;  %vm53_vm1 = vcmask 261120   ;;  %vm140_vm2 = vcmask 523264   ;;  %s381_s1 = inlined_call_operand.vmem [shape: bf16[32,64], index: 1, kind: input, shape index: {}]   ;;  %s382_s0 = inlined_call_operand.vmem [shape: f32[16,32], index: 0, kind: input, shape index: {}]   ;;  %s383_s3 = inlined_call_operand.vmem [shape: bf16[64,32], index: 3, kind: input, shape index: {}]   ;;  %s384_s2 = inlined_call_operand.vmem [shape: f32[1,64], index: 2, kind: input, shape index: {}]   ;;  %s385_s4 = inlined_call_operand.vmem [shape: f32[1,32], index: 4, kind: input, shape index: {}]   ;;  %s386_s5 = inlined_call_operand.vmem [shape: f32[1,32], index: 5, kind: input, shape index: {}]   ;;  %s387_s6 = inlined_call_operand.vmem [shape: f32[1,32], index: 6, kind: input, shape index: {}]   ;;  %s388_s7 = inlined_call_operand.vmem [shape: f32[16,32], index: 7, kind: output, shape index: {}]  }
   0x1   :  { %258 = vmatprep.subr.bf16.mxu0 %v290_v0  ;;  %v280_v1 = vld [vmem:[%s381_s1] sm:$0xff]   ;;  %262 = vmatprep.mubr.msk.bf16.mxu0 %vm291_vm0, %v290_v0  ;;  %v281_v2 = vld [vmem:[%s381_s1 + $0x8] sm:$0xff]   ;;  %v284_v8 = vld [vmem:[%s383_s3 + $0x10] sm:$0xff]  }
   0x2   :  { %266 = vmatprep.subr.bf16.mxu1 %v290_v0  ;;  %274 = vmatprep.mubr.msk.bf16.mxu1 %vm291_vm0, %v290_v0  ;;  %v27_v3 = vld [vmem:[%s382_s0] sm:$0xff]  ;;  %v28_v4 = vld [vmem:[%s382_s0 + $0x8] sm:$0xff]  ;;  %v285_v9 = vld [vmem:[%s383_s3 + $0x18] sm:$0xff]  }
   0x3   :  { %259 = vmatpush3.bf16.msra.mxu0 %v280_v1  ;;  %v282_v5 = vld [vmem:[%s383_s3] sm:$0xff]   ;;  %v283_v6 = vld [vmem:[%s383_s3 + $0x8] sm:$0xff]   ;;  %v29_v7 = vpack.c.bf16 %v28_v4, %v27_v3 }
   0x4   :  { %260 = vmatprep.subr.bf16.mxu0 %v290_v0  ;;  %267 = vmatpush3.bf16.msra.mxu1 %v282_v5  ;;  %v238_v10 = vld [vmem:[%s384_s2] ss:$0 sm:$0xff] }
   0x5   :  { %268 = vmatprep.subr.bf16.mxu1 %v290_v0  ;;  %v242_v20 = vld [vmem:[%s385_s4] ss:$0 sm:$0xff] }
   0x6   :  { %v248_v48 = vld [vmem:[%s386_s5] ss:$0 sm:$0xff] }
   0x7   :  { %261 = vmatpush3.bf16.msra.mxu0 %v281_v2  ;;  %v249_v50 = vld [vmem:[%s387_s6] ss:$0 sm:$0xff] }
   0x8   :  { %269 = vmatpush3.bf16.msra.mxu1 %v283_v6 }
   0x9   :  { %270 = vmatprep.subr.bf16.mxu1 %v290_v0 }
   0xa   :  { %263 = vmatmul.mubr.msk.bf16.vlgmr.msra.gmra.mrb[0].mxu0 %vm53_vm1, %v29_v7 }
   0xc   :  { %271 = vmatpush3.bf16.msra.mxu1 %v284_v8 }
   0xd   :  { %272 = vmatprep.subr.bf16.mxu1 %v290_v0 }
  0x10   :  { %273 = vmatpush3.bf16.msra.mxu1 %v285_v9 }
  0xdd   :  { %v91_v11 = vpop.f32.mrb[0].mxu0 }
  0xde   :  { %v92_v12 = vadd.f32 %v238_v10, %v91_v11  ;;  %v264_v13 = vpop.f32.mrb[1].mxu0 }
  0xdf   :  { %v94_v14 = vpop.f32.mrb[2].mxu0 }
  0xe0   :  { %v95_v15 = vadd.f32 %v238_v10, %v94_v14  ;;  %v265_v16 = vpop.f32.mrb[3].mxu0  ;;  %v98_v17 = vmax.f32 %v92_v12, 0.0 }
  0xe2   :  { %v99_v18 = vmax.f32 %v95_v15, 0.0 }
  0xe4   :  { %v100_v19 = vpack.c.bf16 %v99_v18, %v98_v17 }
  0xe6   :  { %275 = vmatmul.mubr.msk.bf16.vlgmr.msra.gmra.mrb[0].mxu1 %vm140_vm2, %v100_v19 }
 0x1b9   :  { %v178_v21 = vpop.f32.mrb[0].mxu1 }
 0x1ba   :  { %v179_v22 = vadd.f32 %v242_v20, %v178_v21  ;;  %v276_v23 = vpop.f32.mrb[1].mxu1 }
 0x1bb   :  { %v181_v24 = vpop.f32.mrb[2].mxu1 }
 0x1bc   :  { %v182_v25 = vadd.f32 %v242_v20, %v181_v24  ;;  %v277_v26 = vpop.f32.mrb[3].mxu1  ;;  %v185_v27 = vadd.f32 %v179_v22, %v27_v3 }
 0x1be   :  { %v187_v28 = vsel %vm53_vm1, %v185_v27, 0.0  ;;  %v186_v29 = vadd.f32 %v182_v25, %v28_v4 }
 0x1bf   :  { %188 = vadd.xlane.f32.xlu0 %v187_v28 }
 0x1c0   :  { %v190_v30 = vsel %vm53_vm1, %v186_v29, 0.0 }
 0x1c3   :  { %191 = vadd.xlane.f32.xlu0 %v190_v30 }
 0x24c   :  { %v189_v31 = vpop.xlane.xlu0 %188 }
 0x24d   :  { %v194_v32 = vmul.f32 0.03125, %v189_v31 }
 0x24f   :  { %v196_v33 = vsub.f32 %v185_v27, %v194_v32 }
 0x250   :  { %v192_v34 = vpop.xlane.xlu0 %191 }
 0x251   :  { %v195_v35 = vmul.f32 0.03125, %v192_v34  ;;  %v198_v36 = vmul.f32 %v196_v33, %v196_v33 }
 0x253   :  { %v197_v37 = vsub.f32 %v186_v29, %v195_v35  ;;  %v200_v38 = vsel %vm53_vm1, %v198_v36, 0.0 }
 0x254   :  { %201 = vadd.xlane.f32.xlu1 %v200_v38 }
 0x255   :  { %v199_v39 = vmul.f32 %v197_v37, %v197_v37 }
 0x257   :  { %v203_v40 = vsel %vm53_vm1, %v199_v39, 0.0 }
 0x258   :  { %204 = vadd.xlane.f32.xlu1 %v203_v40 }
 0x2e1   :  { %v202_v41 = vpop.xlane.xlu1 %201 }
 0x2e2   :  { %v206_v42 = vmul.f32 0.03125, %v202_v41 }
 0x2e4   :  { %v208_v43 = vadd.f32 1e-05, %v206_v42 }
 0x2e5   :  { %v205_v44 = vpop.xlane.xlu1 %204 }
 0x2e6   :  { %286 = vrsqrt.f32 %v208_v43  ;;  %v207_v45 = vmul.f32 0.03125, %v205_v44 }
 0x2e8   :  { %v209_v46 = vadd.f32 1e-05, %v207_v45 }
 0x2ea   :  { %288 = vrsqrt.f32 %v209_v46 }
 0x2f0   :  { %v287_v47 = vpop.eup %286 }
 0x2f1   :  { %v212_v49 = vmul.f32 %v287_v47, %v196_v33 }
 0x2f3   :  { %v221_v51 = vmul.f32 %v248_v48, %v212_v49 }
 0x2f4   :  { %v289_v52 = vpop.eup %288 }
 0x2f5   :  { %v230_v53 = vadd.f32 %v249_v50, %v221_v51  ;;  %v213_v54 = vmul.f32 %v289_v52, %v197_v37 }
 0x2f7   :  { %232 = vst.msk [vmem:[%s388_s7] sm:$0xff] %vm53_vm1, %v230_v53  ;;  %v222_v55 = vmul.f32 %v248_v48, %v213_v54 }
 0x2f9   :  { %v231_v56 = vadd.f32 %v249_v50, %v222_v55 }
 0x2fb   :  { %233 = vst.msk [vmem:[%s388_s7 + $0x8] sm:$0xff] %vm53_vm1, %v231_v56 }

// kernel: bert_encoder_forward.4
= control target key start
LH: loop header
LB: loop body
LE: loop exit
PB: predicated region body
PF: predicated region fallthrough
CT: control target
= control target key end

     0   :  { %s1511_s0 = inlined_call_operand.vmem [shape: s32[2], index: 0, kind: input, shape index: {}]   ;;  %s1512_s1 = inlined_call_operand.vmem [shape: f32[2,8,32], index: 1, kind: input, shape index: {}]   ;;  %s1513_s2 = inlined_call_operand.vmem [shape: bf16[2,32,16], index: 2, kind: input, shape index: {}]   ;;  %s1514_s3 = inlined_call_operand.vmem [shape: f32[2,1,16], index: 3, kind: input, shape index: {}]   ;;  %s1515_s4 = inlined_call_operand.vmem [shape: bf16[2,32,16], index: 4, kind: input, shape index: {}]   ;;  %s1516_s5 = inlined_call_operand.vmem [shape: f32[2,1,16], index: 5, kind: input, shape index: {}]   ;;  %s1517_s6 = inlined_call_operand.vmem [shape: bf16[2,32,16], index: 6, kind: input, shape index: {}]   ;;  %s1518_s7 = inlined_call_operand.vmem [shape: f32[2,1,16], index: 7, kind: input, shape index: {}]   ;;  %s1519_s8 = inlined_call_operand.vmem [shape: bf16[2,16,32], index: 8, kind: input, shape index: {}]   ;;  %s1520_s9 = inlined_call_operand.vmem [shape: f32[1,32], index: 9, kind: input, shape index: {}]   ;;  %s1521_s10 = inlined_call_operand.vmem [shape: f32[1,32], index: 10, kind: input, shape index: {}]   ;;  %s1522_s11 = inlined_call_operand.vmem [shape: f32[1,32], index: 11, kind: input, shape index: {}]   ;;  %s1523_s12 = inlined_call_operand.vmem [shape: f32[2,8,32], index: 12, kind: output, shape index: {}]  }
   0x1   :  { %1527 = sst [smem:[#allocation11_spill]] %s1512_s1  ;;  %s17_s23 = sshll.u32 %s1511_s0, 4  ;;  %s18_s23 = int_to_ptr.vmem [resolvable:$true] %s17_s23 }
   0x2   :  { %1528 = sst [smem:[#allocation12_spill]] %s1513_s2  ;;  %s1237_s24 = scalar_lea.vmem %s18_s23, 16 }
   0x3   :  { %1529 = sst [smem:[#allocation13_spill]] %s1522_s11  ;;  %p1238_p0 = scmp.ne.s32.totalorder %s18_s23, %s1237_s24 }
   0x4   :  { %p1242_p1 = scmp.lt.s32.totalorder %s18_s23, %s18_s23  ;;  %p1243_p2 = scmp.lt.s32.totalorder %s1237_s24, %s1237_s24 }
   0x6   :  { %p1244_p3 = por %p1243_p2, %p1242_p1 }
   0x8   :  { %p1245_p4 = pnand %p1244_p3, %p1238_p0 }
   0xa   :  { %1248 = shalt.err (!%p1245_p4)  }
   0xb   :  { %s1291_s25 = smov [#allocation4]  }
   0xc   :  { %20 = dma.vmem_to_smem %s18_s23, 16, %s1291_s25, [#allocation3] }
   0xd   :  { %1269 = dma.done.wait [#allocation3], 16 }
   0xe   :  { %1270 = vsyncadd [#allocation3], 4294967280 }
   0xf   :  { %22 = sfence }
  0x10   :  { %s1363_s26 = smov 0   ;;  %s1365_s27 = smov 0  }
  0x11   :  { %s1367_s28 = smov 0   ;;  %s1369_s0 = smov 0  }
  0x12   :  { %s1371_s29 = smov 0  }
  0x13 LB: > { %1530 = sst [smem:[#allocation6_spill]] %s1281_s28  ;;  %s37_s30 = sadd.s32 1, %s1281_s28  ;;  %s1289_s29 = sphi %s1371_s29, %s28_s29   ;;  %s1285_s0 = sphi %s1369_s0, %s1543_s0   ;;  %s1281_s28 = sphi %s1367_s28, %s1542_s28   ;;  %s1277_s27 = sphi %s1365_s27, %s1541_s27   ;;  %s1273_s26 = sphi %s1363_s26, %s1540_s26  }
  0x14   : > { %1531 = sst [smem:[#allocation7_spill]] %s1285_s0  ;;  %s40_s13 = sadd.s32 1, %s1285_s0 }
  0x15   : > { %1532 = sst [smem:[#allocation8_spill]] %s1289_s29  ;;  %p38_p5 = scmp.ge.s32.totalorder %s37_s30, 2 }
  0x16   : > { %p1085_p6 = scmp.ge.s32.totalorder %s1289_s29, 1  ;;  %p419_p7 = scmp.lt.s32.totalorder %s1289_s29, 5 }
  0x17   : > { %s1545_s30 = smov (%p38_p5, %s37_s30), 0  ;;  %s1547_s13 = smov (!%p38_p5, %s40_s13), %s1285_s0 }
  0x18   : > { %1533 = sst [smem:[#allocation9_spill]] %s1545_s30  ;;  %p420_p8 = pnand %p1085_p6, %p419_p7 }
  0x19   : > { %p42_p9 = scmp.ge.s32.totalorder %s1547_s13, 2  ;;  %p486_p10 = scmp.lt.s32.totalorder (!%p420_p8), %s1277_s27, 1 }
  0x1a   : > { %423 = sbr.rel (%p420_p8) target bundleno = 1558 (0x616), region = 64  ;;  %p490_p11 = scmp.lt.s32.totalorder (!%p420_p8), %s1273_s26, 1 }
  0x1b   : > { %s1549_s13 = smov (%p42_p9, %s1547_s13), 0  ;;  %s1535_s1 = sld [smem:[#allocation11_spill]] (!%p420_p8) }
  0x1c   : > { %1534 = sst [smem:[#allocation10_spill]] %s1549_s13  ;;  %s1536_s2 = sld [smem:[#allocation12_spill]] (!%p420_p8) }
  0x1d   : > { %p1096_p12 = scmp.ne.s32.totalorder (!%p420_p8), %s1273_s26, 0 }
  0x21   : > { %s487_s14 = scalar_select %p486_p10, %s1277_s27, 1 }
  0x22   : > { %s1401_s15 = scalar_select %p490_p11, %s1273_s26, 1 }
  0x23   : > { %s1086_s16 = sshll.u32 %s487_s14, 3  ;;  %528 = sbr.rel (%p1096_p12) target bundleno = 42 (0x2a), region = 68  ;;  %vm529_vm0 = vcmask (!%p1096_p12), 261120   ;;  %v1292_v1 = vmov (!%p1096_p12), 0.0  }
  0x24   : > { %s489_s19 = scalar_lea.vmem %s1535_s1, %s1086_s16  ;;  %s1119_s20 = sshll.u32 %s1401_s15, 4  ;;  %530 = vst.msk [vmem:[#allocation2] sm:$0xff] (!%p1096_p12), %vm529_vm0, %v1292_v1 }
  0x25   : > { %s494_s23 = scalar_lea.vmem %s1536_s2, %s1119_s20  ;;  %v1414_v0 = vld [vmem:[%s489_s19] sm:$0xff]  ;;  %s502_s28 = scalar_lea.vmem %s1515_s4, %s1119_s20 }
  0x26   : > { %s505_s17 = scalar_lea.vmem %s1516_s5, %s1401_s15  ;;  %s1426_s11 = scalar_lea.vmem %s1517_s6, %s1119_s20 }
  0x27   : > { %s513_s24 = scalar_lea.vmem %s1518_s7, %s1401_s15  ;;  %s1122_s25 = sshll.u32 %s1401_s15, 3 }
  0x28   : > { %s1436_s2 = scalar_lea.vmem %s1523_s12, %s1086_s16  ;;  %s1441_s29 = scalar_lea.vmem %s1519_s8, %s1122_s25 }
  0x2a PF: > { %v1224_v2 = vld [vmem:[%s502_s28] sm:$0xff]   ;;  %v1293_v3 = vmov 0.0   ;;  %v1226_v5 = vld [vmem:[%s502_s28 + $0x8] sm:$0xff]   ;;  %vm1294_vm1 = vmmov 0   ;;  %v531_v7 = vpack.c.bf16 %v1414_v0, %v1414_v0  ;;  %vm555_vm2 = vcmask 261120   ;;  %s1537_s20 = scalar_lea.vmem %s1514_s3, %s1401_s15  ;;  %p1113_p13 = scmp.ne.s32.totalorder %s1273_s26, 1 }
  0x2b   : > { %1146 = vmatprep.subr.bf16.mxu1 %v1293_v3  ;;  %1138 = vmatprep.subr.bf16.mxu0 %v1293_v3  ;;  %v1225_v4 = vld [vmem:[%s494_s23] sm:$0xff]   ;;  %v1227_v6 = vld [vmem:[%s494_s23 + $0x8] sm:$0xff]   ;;  %vm728_vm3 = vcmask 130048   ;;  %s775_s23 = sld [smem:[#allocation4 + %s1277_s27]]  ;;  %v776_v26 = vlaneseq  ;;  %vm781_vm5 = vcmask 64512   ;;  %vm798_vm6 = vcmask 1043456  }
  0x2c   : > { %1147 = vmatpush3.bf16.msra.mxu1 %v1224_v2  ;;  %1150 = vmatprep.mubr.msk.bf16.mxu1 %vm1294_vm1, %v1293_v3  ;;  %v1101_v8 = vld [vmem:[%s505_s17] ss:$0 sm:$0xff]  ;;  %v1229_v25 = vld [vmem:[%s1426_s11 + $0x8] sm:$0xff]   ;;  %s1538_s22 = sld [smem:[#allocation13_spill]] (!%p1113_p13) }
  0x2d   : > { %1148 = vmatprep.subr.bf16.mxu1 %v1293_v3  ;;  %1139 = vmatpush3.bf16.msra.mxu0 %v1225_v4  ;;  %v1097_v9 = vld [vmem:[%s1537_s20] ss:$0 sm:$0xff]  ;;  %v777_v27 = vand.u32 127, %v776_v26 }
  0x2e   : > { %1140 = vmatprep.subr.bf16.mxu0 %v1293_v3  ;;  %1142 = vmatprep.mubr.msk.bf16.mxu0 %vm1294_vm1, %v1293_v3  ;;  %v1228_v24 = vld [vmem:[%s1426_s11] sm:$0xff]  }
  0x2f   : > { %v1105_v43 = vld [vmem:[%s513_s24] ss:$0 sm:$0xff] }
  0x30   : > { %1149 = vmatpush3.bf16.msra.mxu1 %v1226_v5  ;;  %v1230_v48 = vld [vmem:[%s1441_s29] sm:$0xff]  }
  0x31   : > { %1141 = vmatpush3.bf16.msra.mxu0 %v1227_v6  ;;  %1162 = vmatprep.subr.bf16.mxu1 %v1293_v3  ;;  %v778_v28 = vstv %s775_s23  ;;  %v842_v58 = vld [vmem:[#allocation2] sm:$0xff] }
  0x32   : > { %1154 = vmatprep.subr.bf16.mxu0 %v1293_v3  ;;  %vm779_vm4 = vcmp.lt.s32.totalorder %v777_v27, %v778_v28  ;;  %v1114_v2 = vld [vmem:[%s1520_s9] ss:$0 sm:$0xff] (!%p1113_p13) }
  0x33   : > { %1151 = vmatmul.mubr.msk.bf16.vlgmr.msra.gmra.mrb[0].mxu1 %vm555_vm2, %v531_v7 }
  0x34   : > { %1143 = vmatmul.mubr.msk.bf16.vlgmr.msra.gmra.mrb[0].mxu0 %vm555_vm2, %v531_v7  ;;  %1164 = vmatprep.mubr.msk.bf16.mxu1 %vm1294_vm1, %v1293_v3 }
  0x35   : > { %1158 = vmatprep.mubr.msk.bf16.mxu0 %vm1294_vm1, %v1293_v3  ;;  %1155 = vmatpush3.bf16.msra.mxu0 %v1228_v24 }
  0x36   : > { %1156 = vmatprep.subr.bf16.mxu0 %v1293_v3 }
  0x39   : > { %1157 = vmatpush3.bf16.msra.mxu0 %v1229_v25 }
  0x3a   : > { %1168 = vmatprep.subr.bf16.mxu0 %v1293_v3 }
  0x3c   : > { %1159 = vmatmul.mubr.msk.bf16.vlgmr.msra.gmra.mrb[4].mxu0 %vm555_vm2, %v531_v7 }
  0x3d   : > { %1170 = vmatprep.mubr.msk.bf16.mxu0 %vm1294_vm1, %v1293_v3 }
 0x106   : > { %v657_v10 = vpop.f32.mrb[0].mxu1 }
 0x107   : > { %v658_v11 = vadd.f32 %v1101_v8, %v657_v10  ;;  %v1152_v12 = vpop.f32.mrb[1].mxu1  ;;  %v593_v13 = vpop.f32.mrb[0].mxu0 }
 0x108   : > { %v660_v14 = vpop.f32.mrb[2].mxu1  ;;  %v594_v15 = vadd.f32 %v1097_v9, %v593_v13  ;;  %v1144_v16 = vpop.f32.mrb[1].mxu0 }
 0x109   : > { %v727_v17 = vpack.c.bf16 %v658_v11, %v658_v11  ;;  %v1153_v18 = vpop.f32.mrb[3].mxu1  ;;  %v596_v19 = vpop.f32.mrb[2].mxu0  ;;  %v1116_v16 = vld [vmem:[%s1538_s22] ss:$0 sm:$0xff] (!%p1113_p13) }
 0x10a   : > { %v1145_v20 = vpop.f32.mrb[3].mxu0  ;;  %v599_v22 = vmul.f32 0.25, %v594_v15 }
 0x10b   : > { %v733_v21 = vsel %vm728_vm3, %v727_v17, 0 }
 0x10c   : > { %1163 = vmatpush3.bf16.xpose.msra.mxu1 %v733_v21  ;;  %v726_v23 = vpack.c.bf16 %v599_v22, %v599_v22 }
 0x10d   : > { %1174 = vmatprep.subr.bf16.mxu1 %v1293_v3 }
 0x10f   : > { %v720_v40 = vpop.f32.mrb[4].mxu0 }
 0x110   : > { %v1160_v41 = vpop.f32.mrb[5].mxu0  ;;  %v721_v45 = vadd.f32 %v1105_v43, %v720_v40 }
 0x111   : > { %v723_v42 = vpop.f32.mrb[6].mxu0 }
 0x112   : > { %v1161_v44 = vpop.f32.mrb[7].mxu0  ;;  %v794_v46 = vpack.c.bf16 %v721_v45, %v721_v45 }
 0x113   : > { %1165 = vmatmul.mubr.msk.bf16.vlgmr.msra.gmra.mrb[4].mxu1 %vm728_vm3, %v726_v23 }
 0x114   : > { %1176 = vmatprep.mubr.msk.bf16.mxu1 %vm1294_vm1, %v1293_v3  ;;  %v800_v47 = vsel %vm798_vm6, %v794_v46, 0  ;;  %1175 = vmatpush3.bf16.msra.mxu1 %v1230_v48 }
 0x115   : > { %1169 = vmatpush3.bf16.msra.mxu0 %v800_v47 }
 0x1e6   : > { %v769_v29 = vpop.f32.mrb[4].mxu1 }
 0x1e7   : > { %v780_v30 = vsel %vm779_vm4, %v769_v29, -1000000.0  ;;  %v1166_v31 = vpop.f32.mrb[5].mxu1 }
 0x1e8   : > { %v772_v32 = vpop.f32.mrb[6].mxu1  ;;  %v782_v33 = vsel %vm781_vm5, %v780_v30, -inf }
 0x1e9   : > { %783 = vmax.xlane.f32.xlu0 %v782_v33  ;;  %v1167_v34 = vpop.f32.mrb[7].mxu1 }
 0x276   : > { %v784_v35 = vpop.xlane.xlu0 %783 }
 0x277   : > { %v785_v36 = vsub.f32 %v780_v30, %v784_v35 }
 0x279   : > { %v786_v37 = vmul.f32 1.442695, %v785_v36 }
 0x27b   : > { %1231 = vpow2.f32 %v786_v37 }
 0x285   : > { %v1232_v38 = vpop.eup %1231 }
 0x286   : > { %v788_v39 = vsel %vm781_vm5, %v1232_v38, 0.0 }
 0x287   : > { %789 = vadd.xlane.f32.xlu0 %v788_v39 }
 0x314   : > { %v790_v49 = vpop.xlane.xlu0 %789 }
 0x315   : > { %1233 = vrcp.f32 %v790_v49 }
 0x31f   : > { %v1234_v50 = vpop.eup %1233 }
 0x320   : > { %v792_v51 = vmul.f32 %v1234_v50, %v1232_v38 }
 0x322   : > { %v793_v52 = vpack.c.bf16 %v792_v51, %v792_v51 }
 0x324   : > { %1171 = vmatmul.mubr.msk.bf16.vlgmr.msra.gmra.mrb[8].mxu0 %vm781_vm5, %v793_v52 }
 0x3f7   : > { %v836_v53 = vpop.f32.mrb[8].mxu0 }
 0x3f8   : > { %v843_v54 = vpack.c.bf16 %v836_v53, %v836_v53  ;;  %v1172_v55 = vpop.f32.mrb[9].mxu0 }
 0x3f9   : > { %v839_v56 = vpop.f32.mrb[10].mxu0 }
 0x3fa   : > { %v1173_v57 = vpop.f32.mrb[11].mxu0  ;;  %1177 = vmatmul.mubr.msk.bf16.vlgmr.msra.gmra.mrb[8].mxu1 %vm728_vm3, %v843_v54 }
 0x4ca   : > { %900 = sbr.rel (%p1113_p13) target bundleno = 1558 (0x616), region = 72 }
 0x4cd   : > { %v889_v59 = vpop.f32.mrb[8].mxu1 }
 0x4ce   : > { %v895_v60 = vadd.f32 %v889_v59, %v842_v58  ;;  %v1178_v61 = vpop.f32.mrb[9].mxu1 }
 0x4cf   : > { %v892_v62 = vpop.f32.mrb[10].mxu1 }
 0x4d0   : > { %896 = vst.msk [vmem:[#allocation2] sm:$0xff] %vm555_vm2, %v895_v60  ;;  %v1179_v63 = vpop.f32.mrb[11].mxu1 }
 0x4d7   : > { %v901_v1 = vld [vmem:[#allocation2] sm:$0xff] }
 0x4d8   : > { %v902_v3 = vadd.f32 %v901_v1, %v1414_v0  ;;  %v1115_v0 = vld [vmem:[%s1521_s10] ss:$0 sm:$0xff] }
 0x4da   : > { %v910_v4 = vadd.f32 %v1114_v2, %v902_v3 }
 0x4dc   : > { %v911_v5 = vsel %vm555_vm2, %v910_v4, 0.0 }
 0x4dd   : > { %912 = vadd.xlane.f32.xlu0 %v911_v5 }
 0x56a   : > { %v913_v6 = vpop.xlane.xlu0 %912 }
 0x56b   : > { %v915_v7 = vmul.f32 0.03125, %v913_v6 }
 0x56d   : > { %v916_v8 = vsub.f32 %v910_v4, %v915_v7 }
 0x56f   : > { %v917_v9 = vmul.f32 %v916_v8, %v916_v8 }
 0x571   : > { %v918_v10 = vsel %vm555_vm2, %v917_v9, 0.0 }
 0x572   : > { %919 = vadd.xlane.f32.xlu0 %v918_v10 }
 0x5ff   : > { %v920_v11 = vpop.xlane.xlu0 %919 }
 0x600   : > { %v921_v12 = vmul.f32 0.03125, %v920_v11 }
 0x602   : > { %v922_v13 = vadd.f32 1e-05, %v921_v12 }
 0x604   : > { %1235 = vrsqrt.f32 %v922_v13 }
 0x60e   : > { %v1236_v14 = vpop.eup %1235 }
 0x60f   : > { %v924_v15 = vmul.f32 %v1236_v14, %v916_v8 }
 0x611   : > { %v932_v17 = vmul.f32 %v1115_v0, %v924_v15 }
 0x613   : > { %v940_v18 = vadd.f32 %v1116_v16, %v932_v17 }
 0x615   : > { %941 = vst.msk [vmem:[%s1436_s2] sm:$0xff] %vm555_vm2, %v940_v18 }
 0x616 PF: > { %s1539_s24 = sld [smem:[#allocation8_spill]]  ;;  %s1540_s26 = sld [smem:[#allocation6_spill]] }
 0x617   : > { %s1541_s27 = sld [smem:[#allocation7_spill]]  ;;  %s1542_s28 = sld [smem:[#allocation9_spill]] }
 0x618   : > { %s1543_s0 = sld [smem:[#allocation10_spill]] }
 0x61c   : > { %s28_s29 = sadd.s32 1, %s1539_s24  }
 0x61d   : > { %p25_p0 = scmp.ge.s32.totalorder %s28_s29, 6  }
 0x61f   :  { %27 = sbr.rel (!%p25_p0) target bundleno = 19 (0x13), region = 123 }

</bundles_post_ra>
